<compile_context>
chip_gen: v5e
topology: v5e:2x2
jax: 0.10.0
libtpu: 0.0.40
codegen_flags: <defaults>
</compile_context>

<pallas_src>
import math

import jax
import jax.numpy as jnp
from jax.experimental import pallas as pl
from jax.experimental.pallas import tpu as pltpu

HEAD_PAD = 128      # lane-dense padded width of the final (H2 -> 1) projection
K_TILE_MAX = 2048   # stream W1 in (K_TILE_MAX, H1) tiles when D_in exceeds this


def _round_up(x, m):
    return (x + m - 1) // m * m


def fnn_kernel(x_ref, w1_ref, b1_ref, w2_ref, b2_ref, w3_ref, b3_ref, o_ref, h1_acc):
    """Fused 3-layer MLP forward for one (batch-tile, K-tile) grid cell.

    x_ref  : (TM, TK)        input tile (f32 or bf16)
    w1_ref : (TK, H1)  bf16   / b1: (1, H1)  f32
    w2_ref : (H1, H2)  bf16   / b2: (1, H2)  f32
    w3_ref : (H2, 128) bf16   / b3: (1, 128) f32   (zero-padded beyond column 0)
    o_ref  : (TM, 128) f32    (column 0 is the real output)
    h1_acc : (TM, H1)  f32 VMEM scratch (layer-1 accumulator across K tiles)
    """
    k = pl.program_id(1)

    @pl.when(k == 0)
    def _():
        h1_acc[...] = jnp.zeros_like(h1_acc)

    # Layer 1 partial product: bf16 operands, f32 MXU accumulation.
    x = x_ref[...].astype(jnp.bfloat16)
    h1_acc[...] += jnp.dot(x, w1_ref[...], preferred_element_type=jnp.float32)

    @pl.when(k == pl.num_programs(1) - 1)
    def _():
        # Layer 1 bias + ReLU (f32 elementwise).
        h1 = jnp.maximum(h1_acc[...] + b1_ref[...], 0.0)
        # Layer 2: Linear + ReLU.
        h2 = jnp.dot(h1.astype(jnp.bfloat16), w2_ref[...],
                     preferred_element_type=jnp.float32) + b2_ref[...]
        h2 = jnp.maximum(h2, 0.0)
        # Output head (lane-dense 128-wide pad) + Sigmoid.
        logits = jnp.dot(h2.astype(jnp.bfloat16), w3_ref[...],
                         preferred_element_type=jnp.float32) + b3_ref[...]
        o_ref[...] = jax.nn.sigmoid(logits)


def prepare_params(params):
    """One-time weight prep: transpose-free bf16 weights, f32 biases, 128-padded head,
    and zero-padding of W1 rows to a multiple of the K tile."""
    (w1, b1), (w2, b2), (w3, b3) = params
    din, h1 = w1.shape
    h2 = w2.shape[1]

    tk = din if din <= K_TILE_MAX else K_TILE_MAX
    din_pad = _round_up(din, tk)

    w1b = jnp.zeros((din_pad, h1), jnp.bfloat16).at[:din, :].set(w1.astype(jnp.bfloat16))
    w2b = w2.astype(jnp.bfloat16)
    w3p = jnp.zeros((h2, HEAD_PAD), jnp.bfloat16).at[:, :1].set(w3.astype(jnp.bfloat16))
    b1f = b1.reshape(1, h1).astype(jnp.float32)
    b2f = b2.reshape(1, h2).astype(jnp.float32)
    b3p = jnp.zeros((1, HEAD_PAD), jnp.float32).at[:, :1].set(
        b3.reshape(1, 1).astype(jnp.float32))
    return (w1b, b1f, w2b, b2f, w3p, b3p)


def fnn_forward(x, prepared, *, tm=None):
    """Run the fused FNN forward via pallas_call. Returns (B, 1) float32."""
    w1b, b1f, w2b, b2f, w3p, b3p = prepared
    B, din = x.shape
    din_pad, H1 = w1b.shape
    H2 = w2b.shape[1]

    tk = din_pad if din_pad <= K_TILE_MAX else K_TILE_MAX
    kt = din_pad // tk

    # Batch tile: tiny batches run in a single step; larger batches get >= 2 steps so the
    # "parallel" batch axis can shard across v7x's two TensorCores, capped at 512 rows.
    if tm is None:
        if B <= 32:
            tm = B
        else:
            tm = min(512, _round_up(pl.cdiv(B, 2), 8))
    B_pad = _round_up(B, tm)

    # Zero-pad batch and feature dims as needed (zeros contribute nothing to the matmul).
    x_p = x
    if B_pad != B or din_pad != din:
        x_p = jnp.zeros((B_pad, din_pad), x.dtype).at[:B, :din].set(x)

    grid = (B_pad // tm, kt)

    # Constant-index operands are never re-fetched -> a single VMEM buffer suffices.
    resident = pl.Buffered(1)
    w1_mode = pl.Buffered(1) if kt == 1 else pl.Buffered(2)

    in_specs = [
        pl.BlockSpec((tm, tk), lambda i, k: (i, k)),                          # x tile
        pl.BlockSpec((tk, H1), lambda i, k: (k, 0), pipeline_mode=w1_mode),   # W1 (K-tiled)
        pl.BlockSpec((1, H1), lambda i, k: (0, 0), pipeline_mode=resident),   # b1
        pl.BlockSpec((H1, H2), lambda i, k: (0, 0), pipeline_mode=resident),  # W2
        pl.BlockSpec((1, H2), lambda i, k: (0, 0), pipeline_mode=resident),   # b2
        pl.BlockSpec((H2, HEAD_PAD), lambda i, k: (0, 0), pipeline_mode=resident),  # W3
        pl.BlockSpec((1, HEAD_PAD), lambda i, k: (0, 0), pipeline_mode=resident),   # b3
    ]
    out_specs = pl.BlockSpec((tm, HEAD_PAD), lambda i, k: (i, 0))

    # VMEM footprint -> explicit scoped-VMEM limit (v5e default is only 16 MiB).
    x_bytes = 2 * tm * tk * x_p.dtype.itemsize
    w1_bytes = (1 if kt == 1 else 2) * tk * H1 * 2
    const_bytes = H1 * 4 + H1 * H2 * 2 + H2 * 4 + H2 * HEAD_PAD * 2 + HEAD_PAD * 4
    out_bytes = 2 * tm * HEAD_PAD * 4
    acc_bytes = tm * H1 * 4
    footprint = x_bytes + w1_bytes + const_bytes + out_bytes + acc_bytes
    vmem_limit = int(min(100 * 2**20, max(32 * 2**20, 2 * footprint)))

    flops = 2 * B_pad * (din_pad * H1 + H1 * H2 + H2 * HEAD_PAD)
    bytes_accessed = (
        B_pad * din_pad * x_p.dtype.itemsize
        + din_pad * H1 * 2 + H1 * H2 * 2 + H2 * HEAD_PAD * 2
        + (H1 + H2 + HEAD_PAD) * 4
        + B_pad * HEAD_PAD * 4
    )

    out = pl.pallas_call(
        fnn_kernel,
        out_shape=jax.ShapeDtypeStruct((B_pad, HEAD_PAD), jnp.float32),
        grid_spec=pltpu.PrefetchScalarGridSpec(
            num_scalar_prefetch=0,
            grid=grid,
            in_specs=in_specs,
            out_specs=out_specs,
            scratch_shapes=[pltpu.VMEM((tm, H1), jnp.float32)],
        ),
        compiler_params=pltpu.CompilerParams(
            dimension_semantics=("parallel", "arbitrary"),
            vmem_limit_bytes=vmem_limit,
        ),
        cost_estimate=pl.CostEstimate(
            flops=flops,
            transcendentals=B_pad * HEAD_PAD,
            bytes_accessed=bytes_accessed,
        ),
    )(x_p, w1b, b1f, w2b, b2f, w3p, b3p)

    return out[:B, :1]


def init_linear(key, fan_in, fan_out):
    """Deterministic init mimicking PyTorch nn.Linear default (uniform +/- 1/sqrt(fan_in))."""
    kw, kb = jax.random.split(key)
    bound = 1.0 / math.sqrt(fan_in)
    # stored as [in, out] so the kernel does x @ W
    w = jax.random.uniform(kw, (fan_in, fan_out), jnp.float32, -bound, bound)
    b = jax.random.uniform(kb, (1, fan_out), jnp.float32, -bound, bound)
    return w, b


def fnn_reference(x, params):
    """Pure-JAX reference with the same bf16-operand / f32-accumulate pattern.
    (bf16 operand rounding is by design; error vs a pure-f32 PyTorch forward grows
    mildly with D_in — acceptable for this sigmoid-bounded output.)"""
    (w1, b1), (w2, b2), (w3, b3) = params
    xb = x.astype(jnp.bfloat16)
    h1 = jnp.maximum(
        jnp.dot(xb, w1.astype(jnp.bfloat16), preferred_element_type=jnp.float32) + b1, 0.0)
    h2 = jnp.maximum(
        jnp.dot(h1.astype(jnp.bfloat16), w2.astype(jnp.bfloat16),
                preferred_element_type=jnp.float32) + b2, 0.0)
    logits = jnp.dot(h2.astype(jnp.bfloat16), w3.astype(jnp.bfloat16),
                     preferred_element_type=jnp.float32) + b3
    return jax.nn.sigmoid(logits)


def _run_case(key, batch, input_size, hidden):
    k_x, k1, k2, k3 = jax.random.split(key, 4)
    params = (
        init_linear(k1, input_size, hidden[0]),
        init_linear(k2, hidden[0], hidden[1]),
        init_linear(k3, hidden[1], 1),
    )
    prepared = prepare_params(params)
    x = jax.random.normal(k_x, (batch, input_size), jnp.float32)

    out = jax.block_until_ready(fnn_forward(x, prepared))
    ref = jax.block_until_ready(fnn_reference(x, params))

    assert out.shape == (batch, 1), out.shape
    assert jnp.allclose(out, ref, atol=1e-3, rtol=1e-3), "mismatch vs reference"


if __name__ == "__main__":
    root = jax.random.PRNGKey(0)
    k_a, k_b = jax.random.split(root)

    # Case 1: tiny batch, small width — single grid step, fully fused (kt == 1).
    _run_case(k_a, batch=16, input_size=1024, hidden=[512, 256])

    # Case 2: non-multiple-of-8 batch + wide input — exercises batch padding and the
    # K-tiled W1 path (kt == 2) with the f32 scratch accumulator.
    _run_case(k_b, batch=40, input_size=4096, hidden=[512, 256])

    print("KERNEL_OK")
</pallas_src>

<mosaic_0001>
module attributes {stable_mosaic.version = 11 : i64} {
  func.func @fnn_kernel(%arg0: i32, %arg1: i32, %arg2: memref<16x1024xf32, #tpu.memory_space<vmem>>, %arg3: memref<1024x512xbf16, #tpu.memory_space<vmem>>, %arg4: memref<1x512xf32, #tpu.memory_space<vmem>>, %arg5: memref<512x256xbf16, #tpu.memory_space<vmem>>, %arg6: memref<1x256xf32, #tpu.memory_space<vmem>>, %arg7: memref<256x128xbf16, #tpu.memory_space<vmem>>, %arg8: memref<1x128xf32, #tpu.memory_space<vmem>>, %arg9: memref<16x128xf32, #tpu.memory_space<vmem>>, %arg10: memref<16x512xf32, #tpu.memory_space<vmem>>) attributes {dimension_semantics = [#tpu.dimension_semantics<parallel>, #tpu.dimension_semantics<arbitrary>], iteration_bounds = array<i64: 1, 1>, scalar_prefetch = 0 : i64, scratch_operands = 1 : i64, tpu.core_type = #tpu.core_type<tc>, window_params = [{transform_indices = @transform_0, window_bounds = array<i64: 16, 1024>}, {pipeline_mode = #tpu.pipeline_mode<synchronous>, transform_indices = @transform_1, window_bounds = array<i64: 1024, 512>}, {pipeline_mode = #tpu.pipeline_mode<synchronous>, transform_indices = @transform_2, window_bounds = array<i64: 1, 512>}, {pipeline_mode = #tpu.pipeline_mode<synchronous>, transform_indices = @transform_3, window_bounds = array<i64: 512, 256>}, {pipeline_mode = #tpu.pipeline_mode<synchronous>, transform_indices = @transform_4, window_bounds = array<i64: 1, 256>}, {pipeline_mode = #tpu.pipeline_mode<synchronous>, transform_indices = @transform_5, window_bounds = array<i64: 256, 128>}, {pipeline_mode = #tpu.pipeline_mode<synchronous>, transform_indices = @transform_6, window_bounds = array<i64: 1, 128>}, {transform_indices = @transform_7, window_bounds = array<i64: 16, 128>}]} {
    %c0_i32 = arith.constant 0 : i32
    %0 = arith.cmpi eq, %arg1, %c0_i32 : i32
    %1 = arith.extui %0 : i1 to i32
    %c0_i32_0 = arith.constant 0 : i32
    %2 = arith.cmpi ne, %1, %c0_i32_0 : i32
    scf.if %2 {
      %cst_10 = arith.constant 0.000000e+00 : f32
      %13 = vector.broadcast %cst_10 : f32 to vector<16x512xf32>
      %c0_11 = arith.constant 0 : index
      %c0_12 = arith.constant 0 : index
      %14 = vector.load %arg10[%c0_11, %c0_12] : memref<16x512xf32, #tpu.memory_space<vmem>>, vector<16x512xf32>
      tpu.vector_store %arg10[%c0_11, %c0_12], %13 {strides = array<i32>} : memref<16x512xf32, #tpu.memory_space<vmem>>, vector<16x512xf32>,
    } else {
    }
    %c0 = arith.constant 0 : index
    %c0_1 = arith.constant 0 : index
    %3 = vector.load %arg2[%c0, %c0_1] : memref<16x1024xf32, #tpu.memory_space<vmem>>, vector<16x1024xf32>
    %4 = arith.truncf %3 : vector<16x1024xf32> to vector<16x1024xbf16>
    %c0_2 = arith.constant 0 : index
    %c0_3 = arith.constant 0 : index
    %5 = vector.load %arg10[%c0_2, %c0_3] : memref<16x512xf32, #tpu.memory_space<vmem>>, vector<16x512xf32>
    %c0_4 = arith.constant 0 : index
    %c0_5 = arith.constant 0 : index
    %6 = vector.load %arg3[%c0_4, %c0_5] : memref<1024x512xbf16, #tpu.memory_space<vmem>>, vector<1024x512xbf16>
    %cst = arith.constant dense<0.000000e+00> : vector<16x512xf32>
    %7 = tpu.matmul %4, %6, %cst {dimension_numbers = #tpu.dot_dimension_numbers<[1], [0], [0], [1], [0, 0, 1, 1], [], []>} : vector<16x1024xbf16>, vector<1024x512xbf16>, vector<16x512xf32> -> vector<16x512xf32>
    %8 = arith.addf %5, %7 : vector<16x512xf32>
    %c0_6 = arith.constant 0 : index
    %c0_7 = arith.constant 0 : index
    %9 = vector.load %arg10[%c0_6, %c0_7] : memref<16x512xf32, #tpu.memory_space<vmem>>, vector<16x512xf32>
    tpu.vector_store %arg10[%c0_6, %c0_7], %8 {strides = array<i32>} : memref<16x512xf32, #tpu.memory_space<vmem>>, vector<16x512xf32>,
    %c0_i32_8 = arith.constant 0 : i32
    %10 = arith.cmpi eq, %arg1, %c0_i32_8 : i32
    %11 = arith.extui %10 : i1 to i32
    %c0_i32_9 = arith.constant 0 : i32
    %12 = arith.cmpi ne, %11, %c0_i32_9 : i32
    scf.if %12 {
      %c0_10 = arith.constant 0 : index
      %c0_11 = arith.constant 0 : index
      %13 = vector.load %arg10[%c0_10, %c0_11] : memref<16x512xf32, #tpu.memory_space<vmem>>, vector<16x512xf32>
      %c0_12 = arith.constant 0 : index
      %c0_13 = arith.constant 0 : index
      %14 = vector.load %arg4[%c0_12, %c0_13] : memref<1x512xf32, #tpu.memory_space<vmem>>, vector<1x512xf32>
      %15 = vector.broadcast %14 : vector<1x512xf32> to vector<16x512xf32>
      %16 = arith.addf %13, %15 : vector<16x512xf32>
      %cst_14 = arith.constant 0.000000e+00 : f32
      %17 = vector.broadcast %cst_14 : f32 to vector<16x512xf32>
      %18 = arith.maximumf %16, %17 : vector<16x512xf32>
      %19 = arith.truncf %18 : vector<16x512xf32> to vector<16x512xbf16>
      %c0_15 = arith.constant 0 : index
      %c0_16 = arith.constant 0 : index
      %20 = vector.load %arg5[%c0_15, %c0_16] : memref<512x256xbf16, #tpu.memory_space<vmem>>, vector<512x256xbf16>
      %cst_17 = arith.constant dense<0.000000e+00> : vector<16x256xf32>
      %21 = tpu.matmul %19, %20, %cst_17 {dimension_numbers = #tpu.dot_dimension_numbers<[1], [0], [0], [1], [0, 0, 1, 1], [], []>} : vector<16x512xbf16>, vector<512x256xbf16>, vector<16x256xf32> -> vector<16x256xf32>
      %c0_18 = arith.constant 0 : index
      %c0_19 = arith.constant 0 : index
      %22 = vector.load %arg6[%c0_18, %c0_19] : memref<1x256xf32, #tpu.memory_space<vmem>>, vector<1x256xf32>
      %23 = vector.broadcast %22 : vector<1x256xf32> to vector<16x256xf32>
      %24 = arith.addf %21, %23 : vector<16x256xf32>
      %cst_20 = arith.constant 0.000000e+00 : f32
      %25 = vector.broadcast %cst_20 : f32 to vector<16x256xf32>
      %26 = arith.maximumf %24, %25 : vector<16x256xf32>
      %27 = arith.truncf %26 : vector<16x256xf32> to vector<16x256xbf16>
      %c0_21 = arith.constant 0 : index
      %c0_22 = arith.constant 0 : index
      %28 = vector.load %arg7[%c0_21, %c0_22] : memref<256x128xbf16, #tpu.memory_space<vmem>>, vector<256x128xbf16>
      %cst_23 = arith.constant dense<0.000000e+00> : vector<16x128xf32>
      %29 = tpu.matmul %27, %28, %cst_23 {dimension_numbers = #tpu.dot_dimension_numbers<[1], [0], [0], [1], [0, 0, 1, 1], [], []>} : vector<16x256xbf16>, vector<256x128xbf16>, vector<16x128xf32> -> vector<16x128xf32>
      %c0_24 = arith.constant 0 : index
      %c0_25 = arith.constant 0 : index
      %30 = vector.load %arg8[%c0_24, %c0_25] : memref<1x128xf32, #tpu.memory_space<vmem>>, vector<1x128xf32>
      %31 = vector.broadcast %30 : vector<1x128xf32> to vector<16x128xf32>
      %32 = arith.addf %29, %31 : vector<16x128xf32>
      %33 = arith.negf %32 : vector<16x128xf32>
      %34 = math.exp %33 : vector<16x128xf32>
      %cst_26 = arith.constant 1.000000e+00 : f32
      %35 = vector.broadcast %cst_26 : f32 to vector<16x128xf32>
      %36 = arith.addf %35, %34 : vector<16x128xf32>
      %37 = arith.divf %35, %36 : vector<16x128xf32>
      %c0_27 = arith.constant 0 : index
      %c0_28 = arith.constant 0 : index
      %38 = vector.load %arg9[%c0_27, %c0_28] : memref<16x128xf32, #tpu.memory_space<vmem>>, vector<16x128xf32>
      tpu.vector_store %arg9[%c0_27, %c0_28], %37 {strides = array<i32>} : memref<16x128xf32, #tpu.memory_space<vmem>>, vector<16x128xf32>,
    } else {
    }
    return
  }
  func.func @transform_0(%arg0: i32, %arg1: i32) -> (i32, i32) {
    %c0_i32 = arith.constant 0 : i32
    return %arg0, %arg1 : i32, i32
  }
  func.func @transform_1(%arg0: i32, %arg1: i32) -> (i32, i32) {
    %c0_i32 = arith.constant 0 : i32
    %c0_i32_0 = arith.constant 0 : i32
    return %arg1, %c0_i32 : i32, i32
  }
  func.func @transform_2(%arg0: i32, %arg1: i32) -> (i32, i32) {
    %c0_i32 = arith.constant 0 : i32
    %c0_i32_0 = arith.constant 0 : i32
    %c0_i32_1 = arith.constant 0 : i32
    return %c0_i32, %c0_i32_0 : i32, i32
  }
  func.func @transform_3(%arg0: i32, %arg1: i32) -> (i32, i32) {
    %c0_i32 = arith.constant 0 : i32
    %c0_i32_0 = arith.constant 0 : i32
    %c0_i32_1 = arith.constant 0 : i32
    return %c0_i32, %c0_i32_0 : i32, i32
  }
  func.func @transform_4(%arg0: i32, %arg1: i32) -> (i32, i32) {
    %c0_i32 = arith.constant 0 : i32
    %c0_i32_0 = arith.constant 0 : i32
    %c0_i32_1 = arith.constant 0 : i32
    return %c0_i32, %c0_i32_0 : i32, i32
  }
  func.func @transform_5(%arg0: i32, %arg1: i32) -> (i32, i32) {
    %c0_i32 = arith.constant 0 : i32
    %c0_i32_0 = arith.constant 0 : i32
    %c0_i32_1 = arith.constant 0 : i32
    return %c0_i32, %c0_i32_0 : i32, i32
  }
  func.func @transform_6(%arg0: i32, %arg1: i32) -> (i32, i32) {
    %c0_i32 = arith.constant 0 : i32
    %c0_i32_0 = arith.constant 0 : i32
    %c0_i32_1 = arith.constant 0 : i32
    return %c0_i32, %c0_i32_0 : i32, i32
  }
  func.func @transform_7(%arg0: i32, %arg1: i32) -> (i32, i32) {
    %c0_i32 = arith.constant 0 : i32
    %c0_i32_0 = arith.constant 0 : i32
    return %arg0, %c0_i32 : i32, i32
  }
}

</mosaic_0001>

<bundles_post_ra>
// kernel: tpu_custom_call.1
= control target key start
LH: loop header
LB: loop body
LE: loop exit
PB: predicated region body
PF: predicated region fallthrough
CT: control target
= control target key end

     0   :  { %12 = vsyncpa [#allocation4], 0  ;;  %s4966_s0 = inlined_call_operand.hbm [shape: f32[16,1024], index: 0, kind: input, shape index: {}]   ;;  %s4967_s1 = inlined_call_operand.hbm [shape: bf16[1024,512], index: 1, kind: input, shape index: {}]   ;;  %s4968_s2 = inlined_call_operand.hbm [shape: f32[1,512], index: 2, kind: input, shape index: {}]   ;;  %s4969_s3 = inlined_call_operand.hbm [shape: bf16[512,256], index: 3, kind: input, shape index: {}]   ;;  %s4970_s4 = inlined_call_operand.vmem [shape: f32[1,256], index: 4, kind: input, shape index: {}]   ;;  %s4971_s5 = inlined_call_operand.hbm [shape: bf16[256,128], index: 5, kind: input, shape index: {}]   ;;  %s4972_s6 = inlined_call_operand.vmem [shape: f32[1,128], index: 6, kind: input, shape index: {}]   ;;  %s4973_s7 = inlined_call_operand.hbm [shape: f32[16,128], index: 7, kind: output, shape index: {}]  }
   0x1   :  { %13 = vsyncpa [#allocation7], 0 }
   0x2   :  { %14 = vsyncpa [#allocation10], 0  ;;  %s33_s26 = sshll.u32 %s4967_s1, 4  ;;  %s34_s26 = int_to_ptr.hbm [resolvable:$true] %s33_s26 }
   0x3   :  { %15 = vsyncpa [#allocation5], 0  ;;  %s4773_s27 = smov [#allocation6]   ;;  %s57_s8 = sshll.u32 %s4969_s3, 4  ;;  %s58_s8 = int_to_ptr.hbm [resolvable:$true] %s57_s8 }
   0x4   :  { %s35_s28 = sshll.u32 %s4773_s27, 4  ;;  %s4774_s9 = smov 256   ;;  %s36_s28 = int_to_ptr.vmem [resolvable:$true] %s35_s28 }
   0x5   :  { %s4775_s10 = smov 16   ;;  %s4776_s11 = smov [#allocation9]  }
   0x6   :  { %41 = dma.hbm_to_vmem [thread:$0]  %s34_s26, 32768, %s36_s28, [#allocation7], %s4774_s9, %s4774_s9, %s4775_s10  }
   0x7   :  { %s59_s12 = sshll.u32 %s4776_s11, 4  ;;  %s4777_s13 = smov 128   ;;  %s60_s12 = int_to_ptr.vmem [resolvable:$true] %s59_s12 }
   0x8   :  { %s4778_s14 = smov 8   ;;  %s20_s16 = sshll.u32 %s4966_s0, 4  ;;  %s21_s16 = int_to_ptr.hbm [resolvable:$true] %s20_s16 }
   0x9   :  { %65 = dma.hbm_to_vmem [thread:$0]  %s58_s8, 8192, %s60_s12, [#allocation10], %s4777_s13, %s4777_s13, %s4778_s14  }
   0xa   :  { %s4779_s17 = smov [#allocation3]   ;;  %s47_s20 = sshll.u32 %s4968_s2, 4  ;;  %s48_s20 = int_to_ptr.hbm [resolvable:$true] %s47_s20 }
   0xb   :  { %s22_s3 = sshll.u32 %s4779_s17, 4  ;;  %s4780_s21 = smov 1024   ;;  %s23_s3 = int_to_ptr.vmem [resolvable:$true] %s22_s3 }
   0xc   :  { %s4781_s22 = smov 64   ;;  %s4782_s23 = smov [#allocation8]  }
   0xd   :  { %28 = dma.hbm_to_vmem [thread:$0]  %s21_s16, 2048, %s23_s3, [#allocation4], %s4780_s21, %s4780_s21, %s4781_s22  }
   0xe   :  { %s49_s24 = sshll.u32 %s4782_s23, 4  ;;  %s72_s27 = sshll.u32 %s4971_s5, 4  ;;  %s50_s24 = int_to_ptr.vmem [resolvable:$true] %s49_s24  ;;  %s73_s27 = int_to_ptr.hbm [resolvable:$true] %s72_s27 }
   0xf   :  { %52 = dma.hbm_to_vmem [thread:$0]  %s48_s20, 64, %s50_s24, [#allocation7]  }
  0x10   :  { %s4783_s0 = smov [#allocation11]   ;;  %s4784_s29 = smov 4  }
  0x11   :  { %s74_s28 = sshll.u32 %s4783_s0, 4  ;;  %s75_s28 = int_to_ptr.vmem [resolvable:$true] %s74_s28 }
  0x12   :  { %80 = dma.hbm_to_vmem [thread:$0]  %s73_s27, 2048, %s75_s28, [#allocation10], %s4781_s22, %s4781_s22, %s4784_s29  }
  0x13   :  { %4765 = dma.done.wait [#allocation4], 2048  }
  0x14   :  { %4766 = vsyncadd [#allocation4], 4294965248 }
  0x15   :  { %4767 = dma.done.wait [#allocation7], 32832  }
  0x16   :  { %4768 = vsyncadd [#allocation7], 4294934464 }
  0x17   :  { %4769 = dma.done.wait [#allocation10], 10240  }
  0x18   :  { %4770 = vsyncadd [#allocation10], 4294957056  ;;  %v3031_v0 = vld [vmem:[#allocation6 + $0xe0] sm:$0xf]  ;;  %v4293_v1 = vld [vmem:[#allocation6 + $0xec] sm:$0xf0] }
  0x19   :  { %v3159_v2 = vld [vmem:[#allocation6 + $0x1e0] sm:$0xf]  ;;  %v3032_v3 = vor.u32 %v4293_v1, %v3031_v0  ;;  %v4325_v4 = vld [vmem:[#allocation6 + $0x1ec] sm:$0xf0]  ;;  %s2902_s11 = sshll.u32 %s4973_s7, 4  ;;  %s2903_s11 = int_to_ptr.hbm [resolvable:$true] %s2902_s11 }
  0x1a   :  { %v3287_v5 = vld [vmem:[#allocation6 + $0x2e0] sm:$0xf]  ;;  %v4357_v6 = vld [vmem:[#allocation6 + $0x2ec] sm:$0xf0]  ;;  %v3160_v7 = vor.u32 %v4325_v4, %v3159_v2 }
  0x1b   :  { %v3288_v8 = vor.u32 %v4357_v6, %v3287_v5  ;;  %v3415_v9 = vld [vmem:[#allocation6 + $0x3e0] sm:$0xf]  ;;  %v4389_v10 = vld [vmem:[#allocation6 + $0x3ec] sm:$0xf0]  ;;  %1683 = vmatpush.bf16.msra.mxu0 %v3032_v3 }
  0x1c   :  { %v3015_v11 = vld [vmem:[#allocation6 + $0xc0] sm:$0xf]  ;;  %v3416_v12 = vor.u32 %v4389_v10, %v3415_v9  ;;  %v4289_v13 = vld [vmem:[#allocation6 + $0xcc] sm:$0xf0]  ;;  %1697 = vmatpush.bf16.msra.mxu1 %v3160_v7 }
  0x1d   :  { %v3143_v14 = vld [vmem:[#allocation6 + $0x1c0] sm:$0xf]  ;;  %v4321_v15 = vld [vmem:[#allocation6 + $0x1cc] sm:$0xf0]  ;;  %1711 = vmatpush.bf16.msra.mxu2 %v3288_v8  ;;  %v3016_v16 = vor.u32 %v4289_v13, %v3015_v11 }
  0x1e   :  { %v3144_v17 = vor.u32 %v4321_v15, %v3143_v14  ;;  %v3271_v18 = vld [vmem:[#allocation6 + $0x2c0] sm:$0xf]  ;;  %v4353_v19 = vld [vmem:[#allocation6 + $0x2cc] sm:$0xf0]  ;;  %1725 = vmatpush.bf16.msra.mxu3 %v3416_v12 }
  0x1f   :  { %v3399_v20 = vld [vmem:[#allocation6 + $0x3c0] sm:$0xf]  ;;  %v3272_v21 = vor.u32 %v4353_v19, %v3271_v18  ;;  %v4385_v22 = vld [vmem:[#allocation6 + $0x3cc] sm:$0xf0]  ;;  %1684 = vmatpush.bf16.msra.mxu0 %v3016_v16 }
  0x20   :  { %v2999_v23 = vld [vmem:[#allocation6 + $0xa0] sm:$0xf]  ;;  %v4285_v24 = vld [vmem:[#allocation6 + $0xac] sm:$0xf0]  ;;  %v3400_v25 = vor.u32 %v4385_v22, %v3399_v20  ;;  %1698 = vmatpush.bf16.msra.mxu1 %v3144_v17 }
  0x21   :  { %v3127_v26 = vld [vmem:[#allocation6 + $0x1a0] sm:$0xf]  ;;  %v4317_v27 = vld [vmem:[#allocation6 + $0x1ac] sm:$0xf0]  ;;  %v3000_v29 = vor.u32 %v4285_v24, %v2999_v23  ;;  %1712 = vmatpush.bf16.msra.mxu2 %v3272_v21 }
  0x22   :  { %v3255_v28 = vld [vmem:[#allocation6 + $0x2a0] sm:$0xf]  ;;  %v4349_v30 = vld [vmem:[#allocation6 + $0x2ac] sm:$0xf0]  ;;  %v3128_v33 = vor.u32 %v4317_v27, %v3127_v26  ;;  %1726 = vmatpush.bf16.msra.mxu3 %v3400_v25 }
  0x23   :  { %v3383_v31 = vld [vmem:[#allocation6 + $0x3a0] sm:$0xf]  ;;  %v4381_v32 = vld [vmem:[#allocation6 + $0x3ac] sm:$0xf0]  ;;  %v3256_v34 = vor.u32 %v4349_v30, %v3255_v28  ;;  %1685 = vmatpush.bf16.msra.mxu0 %v3000_v29 }
  0x24   :  { %v2983_v35 = vld [vmem:[#allocation6 + $0x80] sm:$0xf]  ;;  %v4281_v36 = vld [vmem:[#allocation6 + $0x8c] sm:$0xf0]  ;;  %v3384_v38 = vor.u32 %v4381_v32, %v3383_v31  ;;  %1699 = vmatpush.bf16.msra.mxu1 %v3128_v33 }
  0x25   :  { %v3111_v37 = vld [vmem:[#allocation6 + $0x180] sm:$0xf]  ;;  %v4313_v39 = vld [vmem:[#allocation6 + $0x18c] sm:$0xf0]  ;;  %v2984_v44 = vor.u32 %v4281_v36, %v2983_v35  ;;  %1713 = vmatpush.bf16.msra.mxu2 %v3256_v34 }
  0x26   :  { %v3239_v40 = vld [vmem:[#allocation6 + $0x280] sm:$0xf]  ;;  %v4345_v41 = vld [vmem:[#allocation6 + $0x28c] sm:$0xf0]  ;;  %v3112_v45 = vor.u32 %v4313_v39, %v3111_v37  ;;  %1727 = vmatpush.bf16.msra.mxu3 %v3384_v38 }
  0x27   :  { %v3367_v42 = vld [vmem:[#allocation6 + $0x380] sm:$0xf]  ;;  %v4377_v43 = vld [vmem:[#allocation6 + $0x38c] sm:$0xf0]  ;;  %v3240_v46 = vor.u32 %v4345_v41, %v3239_v40  ;;  %1686 = vmatpush.bf16.msra.mxu0 %v2984_v44 }
  0x28   :  { %v2967_v47 = vld [vmem:[#allocation6 + $0x60] sm:$0xf]  ;;  %v4277_v48 = vld [vmem:[#allocation6 + $0x6c] sm:$0xf0]  ;;  %v3368_v50 = vor.u32 %v4377_v43, %v3367_v42  ;;  %1700 = vmatpush.bf16.msra.mxu1 %v3112_v45 }
  0x29   :  { %v3095_v49 = vld [vmem:[#allocation6 + $0x160] sm:$0xf]  ;;  %v4309_v51 = vld [vmem:[#allocation6 + $0x16c] sm:$0xf0]  ;;  %v2968_v56 = vor.u32 %v4277_v48, %v2967_v47  ;;  %1714 = vmatpush.bf16.msra.mxu2 %v3240_v46 }
  0x2a   :  { %v3223_v52 = vld [vmem:[#allocation6 + $0x260] sm:$0xf]  ;;  %v4341_v53 = vld [vmem:[#allocation6 + $0x26c] sm:$0xf0]  ;;  %v3096_v57 = vor.u32 %v4309_v51, %v3095_v49  ;;  %1728 = vmatpush.bf16.msra.mxu3 %v3368_v50 }
  0x2b   :  { %v3351_v54 = vld [vmem:[#allocation6 + $0x360] sm:$0xf]  ;;  %v4373_v55 = vld [vmem:[#allocation6 + $0x36c] sm:$0xf0]  ;;  %v3224_v58 = vor.u32 %v4341_v53, %v3223_v52  ;;  %1687 = vmatpush.bf16.msra.mxu0 %v2968_v56 }
  0x2c   :  { %v2951_v59 = vld [vmem:[#allocation6 + $0x40] sm:$0xf]  ;;  %v4273_v60 = vld [vmem:[#allocation6 + $0x4c] sm:$0xf0]  ;;  %v3352_v62 = vor.u32 %v4373_v55, %v3351_v54  ;;  %1701 = vmatpush.bf16.msra.mxu1 %v3096_v57 }
  0x2d   :  { %v3079_v61 = vld [vmem:[#allocation6 + $0x140] sm:$0xf]  ;;  %v4305_v63 = vld [vmem:[#allocation6 + $0x14c] sm:$0xf0]  ;;  %v2952_v4 = vor.u32 %v4273_v60, %v2951_v59  ;;  %1715 = vmatpush.bf16.msra.mxu2 %v3224_v58 }
  0x2e   :  { %v3207_v0 = vld [vmem:[#allocation6 + $0x240] sm:$0xf]  ;;  %v4337_v1 = vld [vmem:[#allocation6 + $0x24c] sm:$0xf0]  ;;  %v3080_v5 = vor.u32 %v4305_v63, %v3079_v61  ;;  %1729 = vmatpush.bf16.msra.mxu3 %v3352_v62 }
  0x2f   :  { %v3335_v2 = vld [vmem:[#allocation6 + $0x340] sm:$0xf]  ;;  %v4369_v3 = vld [vmem:[#allocation6 + $0x34c] sm:$0xf0]  ;;  %v3208_v6 = vor.u32 %v4337_v1, %v3207_v0  ;;  %1688 = vmatpush.bf16.msra.mxu0 %v2952_v4 }
  0x30   :  { %v2935_v7 = vld [vmem:[#allocation6 + $0x20] sm:$0xf]  ;;  %v4269_v8 = vld [vmem:[#allocation6 + $0x2c] sm:$0xf0]  ;;  %v3336_v10 = vor.u32 %v4369_v3, %v3335_v2  ;;  %1702 = vmatpush.bf16.msra.mxu1 %v3080_v5 }
  0x31   :  { %v3063_v9 = vld [vmem:[#allocation6 + $0x120] sm:$0xf]  ;;  %v4301_v11 = vld [vmem:[#allocation6 + $0x12c] sm:$0xf0]  ;;  %v2936_v16 = vor.u32 %v4269_v8, %v2935_v7  ;;  %1716 = vmatpush.bf16.msra.mxu2 %v3208_v6  ;;  %v116_v6 = vld [vmem:[#allocation3 + $0x8] sm:$0xff] }
  0x32   :  { %v3191_v12 = vld [vmem:[#allocation6 + $0x220] sm:$0xf]  ;;  %v4333_v13 = vld [vmem:[#allocation6 + $0x22c] sm:$0xf0]  ;;  %v3064_v19 = vor.u32 %v4301_v11, %v3063_v9  ;;  %1730 = vmatpush.bf16.msra.mxu3 %v3336_v10  ;;  %v124_v7 = vld [vmem:[#allocation3 + $0x48] sm:$0xff] }
  0x33   :  { %v3319_v14 = vld [vmem:[#allocation6 + $0x320] sm:$0xf]  ;;  %v4365_v15 = vld [vmem:[#allocation6 + $0x32c] sm:$0xf0]  ;;  %v3192_v20 = vor.u32 %v4333_v13, %v3191_v12  ;;  %1689 = vmatpush.bf16.msra.mxu0 %v2936_v16  ;;  %v118_v8 = vld [vmem:[#allocation3 + $0x18] sm:$0xff]  ;;  %v4850_v10 = vpack.c.bf16 %v124_v7, %v116_v6 }
  0x34   :  { %v2919_v17 = vld [vmem:[#allocation6] sm:$0xf]  ;;  %v4265_v18 = vld [vmem:[#allocation6 + $0xc] sm:$0xf0]  ;;  %v3320_v24 = vor.u32 %v4365_v15, %v3319_v14  ;;  %1703 = vmatpush.bf16.msra.mxu1 %v3064_v19  ;;  %v126_v11 = vld [vmem:[#allocation3 + $0x58] sm:$0xff] }
  0x35   :  { %v3047_v21 = vld [vmem:[#allocation6 + $0x100] sm:$0xf]  ;;  %v4297_v22 = vld [vmem:[#allocation6 + $0x10c] sm:$0xf0]  ;;  %v2920_v31 = vor.u32 %v4265_v18, %v2919_v17  ;;  %1717 = vmatpush.bf16.msra.mxu2 %v3192_v20  ;;  %v4852_v17 = vpack.c.bf16 %v126_v11, %v118_v8 }
  0x36   :  { %v3175_v23 = vld [vmem:[#allocation6 + $0x200] sm:$0xf]  ;;  %v4329_v25 = vld [vmem:[#allocation6 + $0x20c] sm:$0xf0]  ;;  %v3048_v35 = vor.u32 %v4297_v22, %v3047_v21  ;;  %1731 = vmatpush.bf16.msra.mxu3 %v3320_v24 }
  0x37   :  { %v3303_v26 = vld [vmem:[#allocation6 + $0x300] sm:$0xf]  ;;  %v4361_v27 = vld [vmem:[#allocation6 + $0x30c] sm:$0xf0]  ;;  %v3176_v36 = vor.u32 %v4329_v25, %v3175_v23  ;;  %1690 = vmatpush.bf16.msra.mxu0 %v2920_v31 }
  0x38   :  { %v3543_v28 = vld [vmem:[#allocation6 + $0x4e0] sm:$0xf]  ;;  %v4421_v29 = vld [vmem:[#allocation6 + $0x4ec] sm:$0xf0]  ;;  %v3304_v39 = vor.u32 %v4361_v27, %v3303_v26  ;;  %1704 = vmatpush.bf16.msra.mxu1 %v3048_v35 }
  0x39   :  { %v3671_v30 = vld [vmem:[#allocation6 + $0x5e0] sm:$0xf]  ;;  %v4453_v32 = vld [vmem:[#allocation6 + $0x5ec] sm:$0xf0]  ;;  %v3544_v40 = vor.u32 %v4421_v29, %v3543_v28  ;;  %1718 = vmatpush.bf16.msra.mxu2 %v3176_v36 }
  0x3a   :  { %v3799_v33 = vld [vmem:[#allocation6 + $0x6e0] sm:$0xf]  ;;  %v4485_v34 = vld [vmem:[#allocation6 + $0x6ec] sm:$0xf0]  ;;  %v3672_v43 = vor.u32 %v4453_v32, %v3671_v30  ;;  %1732 = vmatpush.bf16.msra.mxu3 %v3304_v39 }
  0x3b   :  { %v3927_v37 = vld [vmem:[#allocation6 + $0x7e0] sm:$0xf]  ;;  %v4517_v38 = vld [vmem:[#allocation6 + $0x7ec] sm:$0xf0]  ;;  %v3800_v44 = vor.u32 %v4485_v34, %v3799_v33  ;;  %1739 = vmatpush.bf16.msrb.mxu0 %v3544_v40  ;;  %1705 = vmatmul.bf16.vlgmr.msra.gmra.mxu1 %v4850_v10 }
  0x3c   :  { %v3527_v41 = vld [vmem:[#allocation6 + $0x4c0] sm:$0xf]  ;;  %v4417_v42 = vld [vmem:[#allocation6 + $0x4cc] sm:$0xf0]  ;;  %v3928_v48 = vor.u32 %v4517_v38, %v3927_v37  ;;  %1753 = vmatpush.bf16.msrb.mxu1 %v3672_v43 }
  0x3d   :  { %v3655_v45 = vld [vmem:[#allocation6 + $0x5c0] sm:$0xf]  ;;  %v4449_v46 = vld [vmem:[#allocation6 + $0x5cc] sm:$0xf0]  ;;  %v3528_v55 = vor.u32 %v4417_v42, %v3527_v41  ;;  %1767 = vmatpush.bf16.msrb.mxu2 %v3800_v44  ;;  %1733 = vmatmul.bf16.vlgmr.msra.gmra.mxu3 %v4852_v17 }
  0x3e   :  { %v3783_v47 = vld [vmem:[#allocation6 + $0x6c0] sm:$0xf]  ;;  %v4481_v49 = vld [vmem:[#allocation6 + $0x6cc] sm:$0xf0]  ;;  %v3656_v60 = vor.u32 %v4449_v46, %v3655_v45  ;;  %1781 = vmatpush.bf16.msrb.mxu3 %v3928_v48 }
  0x3f   :  { %v3911_v50 = vld [vmem:[#allocation6 + $0x7c0] sm:$0xf]  ;;  %v4513_v51 = vld [vmem:[#allocation6 + $0x7cc] sm:$0xf0]  ;;  %v3784_v61 = vor.u32 %v4481_v49, %v3783_v47  ;;  %1740 = vmatpush.bf16.msrb.mxu0 %v3528_v55 }
  0x40   :  { %v115_v52 = vld [vmem:[#allocation3] sm:$0xff]  ;;  %v117_v54 = vld [vmem:[#allocation3 + $0x10] sm:$0xff]  ;;  %v3912_v2 = vor.u32 %v4513_v51, %v3911_v50  ;;  %1754 = vmatpush.bf16.msrb.mxu1 %v3656_v60 }
  0x41   :  { %v123_v53 = vld [vmem:[#allocation3 + $0x40] sm:$0xff]  ;;  %v4413_v57 = vld [vmem:[#allocation6 + $0x4ac] sm:$0xf0]  ;;  %1768 = vmatpush.bf16.msrb.mxu2 %v3784_v61 }
  0x42   :  { %v3511_v56 = vld [vmem:[#allocation6 + $0x4a0] sm:$0xf]  ;;  %v4844_v58 = vpack.c.bf16 %v123_v53, %v115_v52  ;;  %v125_v59 = vld [vmem:[#allocation3 + $0x50] sm:$0xff]  ;;  %1782 = vmatpush.bf16.msrb.mxu3 %v3912_v2 }
  0x43   :  { %v3639_v62 = vld [vmem:[#allocation6 + $0x5a0] sm:$0xf]  ;;  %v4445_v63 = vld [vmem:[#allocation6 + $0x5ac] sm:$0xf0]  ;;  %v4846_v1 = vpack.c.bf16 %v125_v59, %v117_v54  ;;  %v3512_v9 = vor.u32 %v4413_v57, %v3511_v56 }
  0x44   :  { %v3767_v0 = vld [vmem:[#allocation6 + $0x6a0] sm:$0xf]  ;;  %v4477_v3 = vld [vmem:[#allocation6 + $0x6ac] sm:$0xf0]  ;;  %1691 = vmatmul.bf16.vlgmr.msra.gmra.mxu0 %v4844_v58  ;;  %v3640_v12 = vor.u32 %v4445_v63, %v3639_v62 }
  0x45   :  { %v3895_v4 = vld [vmem:[#allocation6 + $0x7a0] sm:$0xf]  ;;  %v4509_v5 = vld [vmem:[#allocation6 + $0x7ac] sm:$0xf0]  ;;  %1719 = vmatmul.bf16.vlgmr.msra.gmra.mxu2 %v4846_v1  ;;  %v3768_v13 = vor.u32 %v4477_v3, %v3767_v0  ;;  %1741 = vmatpush.bf16.msrb.mxu0 %v3512_v9  ;;  %v4291_v9 = vld [vmem:[#allocation6 + $0xe4] sm:$0xf] }
  0x46   :  { %v3495_v14 = vld [vmem:[#allocation6 + $0x480] sm:$0xf]  ;;  %v4409_v15 = vld [vmem:[#allocation6 + $0x48c] sm:$0xf0]  ;;  %v3896_v18 = vor.u32 %v4509_v5, %v3895_v4  ;;  %1755 = vmatpush.bf16.msrb.mxu1 %v3640_v12  ;;  %v3033_v12 = vld [vmem:[#allocation6 + $0xf0] sm:$0xf0] }
  0x47   :  { %v3623_v16 = vld [vmem:[#allocation6 + $0x580] sm:$0xf]  ;;  %v4441_v19 = vld [vmem:[#allocation6 + $0x58c] sm:$0xf0]  ;;  %v3496_v24 = vor.u32 %v4409_v15, %v3495_v14  ;;  %1769 = vmatpush.bf16.msrb.mxu2 %v3768_v13  ;;  %v4323_v13 = vld [vmem:[#allocation6 + $0x1e4] sm:$0xf] }
  0x48   :  { %v3751_v20 = vld [vmem:[#allocation6 + $0x680] sm:$0xf]  ;;  %v4473_v21 = vld [vmem:[#allocation6 + $0x68c] sm:$0xf0]  ;;  %v3624_v25 = vor.u32 %v4441_v19, %v3623_v16  ;;  %1783 = vmatpush.bf16.msrb.mxu3 %v3896_v18  ;;  %v3161_v14 = vld [vmem:[#allocation6 + $0x1f0] sm:$0xf0] }
  0x49   :  { %v3879_v22 = vld [vmem:[#allocation6 + $0x780] sm:$0xf]  ;;  %v4505_v23 = vld [vmem:[#allocation6 + $0x78c] sm:$0xf0]  ;;  %v3752_v26 = vor.u32 %v4473_v21, %v3751_v20  ;;  %1742 = vmatpush.bf16.msrb.mxu0 %v3496_v24  ;;  %v4355_v15 = vld [vmem:[#allocation6 + $0x2e4] sm:$0xf] }
  0x4a   :  { %v3479_v27 = vld [vmem:[#allocation6 + $0x460] sm:$0xf]  ;;  %v4405_v28 = vld [vmem:[#allocation6 + $0x46c] sm:$0xf0]  ;;  %v3880_v30 = vor.u32 %v4505_v23, %v3879_v22  ;;  %1756 = vmatpush.bf16.msrb.mxu1 %v3624_v25  ;;  %v3289_v16 = vld [vmem:[#allocation6 + $0x2f0] sm:$0xf0] }
  0x4b   :  { %v3607_v29 = vld [vmem:[#allocation6 + $0x560] sm:$0xf]  ;;  %v4437_v31 = vld [vmem:[#allocation6 + $0x56c] sm:$0xf0]  ;;  %v3480_v36 = vor.u32 %v4405_v28, %v3479_v27  ;;  %1770 = vmatpush.bf16.msrb.mxu2 %v3752_v26  ;;  %v4387_v18 = vld [vmem:[#allocation6 + $0x3e4] sm:$0xf] }
  0x4c   :  { %v3735_v32 = vld [vmem:[#allocation6 + $0x660] sm:$0xf]  ;;  %v4469_v33 = vld [vmem:[#allocation6 + $0x66c] sm:$0xf0]  ;;  %v3608_v37 = vor.u32 %v4437_v31, %v3607_v29  ;;  %1784 = vmatpush.bf16.msrb.mxu3 %v3880_v30  ;;  %v3417_v20 = vld [vmem:[#allocation6 + $0x3f0] sm:$0xf0]  ;;  %v3036_v29 = vor.u32 %v4291_v9, %v3033_v12 }
  0x4d   :  { %v3863_v34 = vld [vmem:[#allocation6 + $0x760] sm:$0xf]  ;;  %v4501_v35 = vld [vmem:[#allocation6 + $0x76c] sm:$0xf0]  ;;  %v3736_v38 = vor.u32 %v4469_v33, %v3735_v32  ;;  %1743 = vmatpush.bf16.msrb.mxu0 %v3480_v36  ;;  %v120_v27 = vld [vmem:[#allocation3 + $0x28] sm:$0xff]  ;;  %v3164_v33 = vor.u32 %v4323_v13, %v3161_v14 }
  0x4e   :  { %v3463_v39 = vld [vmem:[#allocation6 + $0x440] sm:$0xf]  ;;  %v4401_v40 = vld [vmem:[#allocation6 + $0x44c] sm:$0xf0]  ;;  %v3864_v42 = vor.u32 %v4501_v35, %v3863_v34  ;;  %1757 = vmatpush.bf16.msrb.mxu1 %v3608_v37  ;;  %v128_v30 = vld [vmem:[#allocation3 + $0x68] sm:$0xff]  ;;  %v3292_v34 = vor.u32 %v4355_v15, %v3289_v16 }
  0x4f   :  { %v3591_v41 = vld [vmem:[#allocation6 + $0x540] sm:$0xf]  ;;  %v4433_v43 = vld [vmem:[#allocation6 + $0x54c] sm:$0xf0]  ;;  %v3464_v48 = vor.u32 %v4401_v40, %v3463_v39  ;;  %1771 = vmatpush.bf16.msrb.mxu2 %v3736_v38  ;;  %v122_v31 = vld [vmem:[#allocation3 + $0x38] sm:$0xff]  ;;  %v3420_v38 = vor.u32 %v4387_v18, %v3417_v20 }
  0x50   :  { %v3719_v44 = vld [vmem:[#allocation6 + $0x640] sm:$0xf]  ;;  %v4465_v45 = vld [vmem:[#allocation6 + $0x64c] sm:$0xf0]  ;;  %v3592_v50 = vor.u32 %v4433_v43, %v3591_v41  ;;  %1785 = vmatpush.bf16.msrb.mxu3 %v3864_v42  ;;  %v130_v32 = vld [vmem:[#allocation3 + $0x78] sm:$0xff] }
  0x51   :  { %v3847_v46 = vld [vmem:[#allocation6 + $0x740] sm:$0xf]  ;;  %v4497_v47 = vld [vmem:[#allocation6 + $0x74c] sm:$0xf0]  ;;  %v3720_v51 = vor.u32 %v4465_v45, %v3719_v44  ;;  %1744 = vmatpush.bf16.msrb.mxu0 %v3464_v48  ;;  %v4287_v35 = vld [vmem:[#allocation6 + $0xc4] sm:$0xf]  ;;  %v4860_v44 = vpack.c.bf16 %v128_v30, %v120_v27 }
  0x52   :  { %v3447_v49 = vld [vmem:[#allocation6 + $0x420] sm:$0xf]  ;;  %v4397_v52 = vld [vmem:[#allocation6 + $0x42c] sm:$0xf0]  ;;  %v3848_v55 = vor.u32 %v4497_v47, %v3847_v46  ;;  %1758 = vmatpush.bf16.msrb.mxu1 %v3592_v50  ;;  %v3017_v36 = vld [vmem:[#allocation6 + $0xd0] sm:$0xf0]  ;;  %v4862_v47 = vpack.c.bf16 %v130_v32, %v122_v31 }
  0x53   :  { %v3575_v53 = vld [vmem:[#allocation6 + $0x520] sm:$0xf]  ;;  %v4429_v54 = vld [vmem:[#allocation6 + $0x52c] sm:$0xf0]  ;;  %v3448_v63 = vor.u32 %v4397_v52, %v3447_v49  ;;  %1772 = vmatpush.bf16.msrb.mxu2 %v3720_v51  ;;  %v4319_v37 = vld [vmem:[#allocation6 + $0x1c4] sm:$0xf]  ;;  %v3020_v48 = vor.u32 %v4287_v35, %v3017_v36 }
  0x54   :  { %v3703_v56 = vld [vmem:[#allocation6 + $0x620] sm:$0xf]  ;;  %v4461_v57 = vld [vmem:[#allocation6 + $0x62c] sm:$0xf0]  ;;  %v3576_v5 = vor.u32 %v4429_v54, %v3575_v53  ;;  %1786 = vmatpush.bf16.msrb.mxu3 %v3848_v55  ;;  %v3145_v40 = vld [vmem:[#allocation6 + $0x1d0] sm:$0xf0] }
  0x55   :  { %v3831_v59 = vld [vmem:[#allocation6 + $0x720] sm:$0xf]  ;;  %v4493_v60 = vld [vmem:[#allocation6 + $0x72c] sm:$0xf0]  ;;  %v3704_v6 = vor.u32 %v4461_v57, %v3703_v56  ;;  %1745 = vmatpush.bf16.msrb.mxu0 %v3448_v63  ;;  %v4351_v41 = vld [vmem:[#allocation6 + $0x2c4] sm:$0xf]  ;;  %v3148_v49 = vor.u32 %v4319_v37, %v3145_v40 }
  0x56   :  { %v3431_v61 = vld [vmem:[#allocation6 + $0x400] sm:$0xf]  ;;  %v4393_v62 = vld [vmem:[#allocation6 + $0x40c] sm:$0xf0]  ;;  %v3832_v11 = vor.u32 %v4493_v60, %v3831_v59  ;;  %1759 = vmatpush.bf16.msrb.mxu1 %v3576_v5  ;;  %v3273_v42 = vld [vmem:[#allocation6 + $0x2d0] sm:$0xf0] }
  0x57   :  { %v3559_v0 = vld [vmem:[#allocation6 + $0x500] sm:$0xf]  ;;  %v4425_v2 = vld [vmem:[#allocation6 + $0x50c] sm:$0xf0]  ;;  %v3432_v19 = vor.u32 %v4393_v62, %v3431_v61  ;;  %1773 = vmatpush.bf16.msrb.mxu2 %v3704_v6  ;;  %v4383_v45 = vld [vmem:[#allocation6 + $0x3c4] sm:$0xf]  ;;  %v3276_v50 = vor.u32 %v4351_v41, %v3273_v42 }
  0x58   :  { %v3687_v3 = vld [vmem:[#allocation6 + $0x600] sm:$0xf]  ;;  %v4457_v4 = vld [vmem:[#allocation6 + $0x60c] sm:$0xf0]  ;;  %v3560_v23 = vor.u32 %v4425_v2, %v3559_v0  ;;  %1787 = vmatpush.bf16.msrb.mxu3 %v3832_v11  ;;  %v3401_v46 = vld [vmem:[#allocation6 + $0x3d0] sm:$0xf0] }
  0x59   :  { %v3815_v7 = vld [vmem:[#allocation6 + $0x700] sm:$0xf]  ;;  %v4489_v8 = vld [vmem:[#allocation6 + $0x70c] sm:$0xf0]  ;;  %v3688_v24 = vor.u32 %v4457_v4, %v3687_v3  ;;  %1746 = vmatpush.bf16.msrb.mxu0 %v3432_v19  ;;  %v4283_v51 = vld [vmem:[#allocation6 + $0xa4] sm:$0xf]  ;;  %v3404_v54 = vor.u32 %v4383_v45, %v3401_v46 }
  0x5a   :  { %v119_v21 = vld [vmem:[#allocation3 + $0x20] sm:$0xff]  ;;  %v121_v25 = vld [vmem:[#allocation3 + $0x30] sm:$0xff]  ;;  %v3816_v28 = vor.u32 %v4489_v8, %v3815_v7  ;;  %1760 = vmatpush.bf16.msrb.mxu1 %v3560_v23 }
  0x5b   :  { %v127_v22 = vld [vmem:[#allocation3 + $0x60] sm:$0xff]  ;;  %v129_v26 = vld [vmem:[#allocation3 + $0x70] sm:$0xff]  ;;  %1774 = vmatpush.bf16.msrb.mxu2 %v3688_v24 }
  0x5c   :  { %v4856_v39 = vpack.c.bf16 %v127_v22, %v119_v21  ;;  %v4858_v43 = vpack.c.bf16 %v129_v26, %v121_v25  ;;  %1788 = vmatpush.bf16.msrb.mxu3 %v3816_v28  ;;  %v3001_v52 = vld [vmem:[#allocation6 + $0xb0] sm:$0xf0]  ;;  %v4315_v53 = vld [vmem:[#allocation6 + $0x1a4] sm:$0xf] }
  0x5d   :  { %1795 = vmatpush.bf16.msra.mxu0 %v3036_v29  ;;  %v3129_v55 = vld [vmem:[#allocation6 + $0x1b0] sm:$0xf0]  ;;  %v4347_v56 = vld [vmem:[#allocation6 + $0x2a4] sm:$0xf]  ;;  %1761 = vmatmul.bf16.vlgmr.msrb.gmra.mxu1 %v4860_v44  ;;  %v3004_v61 = vor.u32 %v4283_v51, %v3001_v52 }
  0x5e   :  { %1809 = vmatpush.bf16.msra.mxu1 %v3164_v33  ;;  %1747 = vmatmul.bf16.vlgmr.msrb.gmra.mxu0 %v4856_v39  ;;  %v3257_v57 = vld [vmem:[#allocation6 + $0x2b0] sm:$0xf0]  ;;  %v4379_v59 = vld [vmem:[#allocation6 + $0x3a4] sm:$0xf]  ;;  %v3132_v62 = vor.u32 %v4315_v53, %v3129_v55 }
  0x5f   :  { %1823 = vmatpush.bf16.msra.mxu2 %v3292_v34  ;;  %v3385_v60 = vld [vmem:[#allocation6 + $0x3b0] sm:$0xf0]  ;;  %1789 = vmatmul.bf16.vlgmr.msrb.gmra.mxu3 %v4862_v47  ;;  %v3260_v63 = vor.u32 %v4347_v56, %v3257_v57  ;;  %v4279_v0 = vld [vmem:[#allocation6 + $0x84] sm:$0xf] }
  0x60   :  { %1837 = vmatpush.bf16.msra.mxu3 %v3420_v38  ;;  %1775 = vmatmul.bf16.vlgmr.msrb.gmra.mxu2 %v4858_v43  ;;  %v2985_v2 = vld [vmem:[#allocation6 + $0x90] sm:$0xf0]  ;;  %v4311_v3 = vld [vmem:[#allocation6 + $0x184] sm:$0xf]  ;;  %v3388_v4 = vor.u32 %v4379_v59, %v3385_v60 }
  0x61   :  { %1796 = vmatpush.bf16.msra.mxu0 %v3020_v48  ;;  %v3113_v5 = vld [vmem:[#allocation6 + $0x190] sm:$0xf0]  ;;  %v4343_v6 = vld [vmem:[#allocation6 + $0x284] sm:$0xf]  ;;  %v2988_v11 = vor.u32 %v4279_v0, %v2985_v2 }
  0x62   :  { %1810 = vmatpush.bf16.msra.mxu1 %v3148_v49  ;;  %v3241_v7 = vld [vmem:[#allocation6 + $0x290] sm:$0xf0]  ;;  %v4375_v8 = vld [vmem:[#allocation6 + $0x384] sm:$0xf]  ;;  %v3116_v12 = vor.u32 %v4311_v3, %v3113_v5 }
  0x63   :  { %1824 = vmatpush.bf16.msra.mxu2 %v3276_v50  ;;  %v3369_v9 = vld [vmem:[#allocation6 + $0x390] sm:$0xf0]  ;;  %v3244_v13 = vor.u32 %v4343_v6, %v3241_v7  ;;  %v4275_v14 = vld [vmem:[#allocation6 + $0x64] sm:$0xf] }
  0x64   :  { %1838 = vmatpush.bf16.msra.mxu3 %v3404_v54  ;;  %v2969_v15 = vld [vmem:[#allocation6 + $0x70] sm:$0xf0]  ;;  %v4307_v16 = vld [vmem:[#allocation6 + $0x164] sm:$0xf]  ;;  %v3372_v18 = vor.u32 %v4375_v8, %v3369_v9 }
  0x65   :  { %1797 = vmatpush.bf16.msra.mxu0 %v3004_v61  ;;  %v3097_v19 = vld [vmem:[#allocation6 + $0x170] sm:$0xf0]  ;;  %v4339_v20 = vld [vmem:[#allocation6 + $0x264] sm:$0xf]  ;;  %v2972_v24 = vor.u32 %v4275_v14, %v2969_v15 }
  0x66   :  { %1811 = vmatpush.bf16.msra.mxu1 %v3132_v62  ;;  %v3225_v21 = vld [vmem:[#allocation6 + $0x270] sm:$0xf0]  ;;  %v4371_v22 = vld [vmem:[#allocation6 + $0x364] sm:$0xf]  ;;  %v3100_v25 = vor.u32 %v4307_v16, %v3097_v19 }
  0x67   :  { %1825 = vmatpush.bf16.msra.mxu2 %v3260_v63  ;;  %v3353_v23 = vld [vmem:[#allocation6 + $0x370] sm:$0xf0]  ;;  %v3228_v26 = vor.u32 %v4339_v20, %v3225_v21  ;;  %v4271_v27 = vld [vmem:[#allocation6 + $0x44] sm:$0xf] }
  0x68   :  { %1839 = vmatpush.bf16.msra.mxu3 %v3388_v4  ;;  %v2953_v28 = vld [vmem:[#allocation6 + $0x50] sm:$0xf0]  ;;  %v4303_v29 = vld [vmem:[#allocation6 + $0x144] sm:$0xf]  ;;  %v3356_v30 = vor.u32 %v4371_v22, %v3353_v23 }
  0x69   :  { %1798 = vmatpush.bf16.msra.mxu0 %v2988_v11  ;;  %v3081_v31 = vld [vmem:[#allocation6 + $0x150] sm:$0xf0]  ;;  %v4335_v32 = vld [vmem:[#allocation6 + $0x244] sm:$0xf]  ;;  %v2956_v36 = vor.u32 %v4271_v27, %v2953_v28 }
  0x6a   :  { %1812 = vmatpush.bf16.msra.mxu1 %v3116_v12  ;;  %v3209_v33 = vld [vmem:[#allocation6 + $0x250] sm:$0xf0]  ;;  %v4367_v34 = vld [vmem:[#allocation6 + $0x344] sm:$0xf]  ;;  %v3084_v37 = vor.u32 %v4303_v29, %v3081_v31 }
  0x6b   :  { %1826 = vmatpush.bf16.msra.mxu2 %v3244_v13  ;;  %v3337_v35 = vld [vmem:[#allocation6 + $0x350] sm:$0xf0]  ;;  %v3212_v38 = vor.u32 %v4335_v32, %v3209_v33  ;;  %v4267_v40 = vld [vmem:[#allocation6 + $0x24] sm:$0xf] }
  0x6c   :  { %1840 = vmatpush.bf16.msra.mxu3 %v3372_v18  ;;  %v2937_v41 = vld [vmem:[#allocation6 + $0x30] sm:$0xf0]  ;;  %v4299_v42 = vld [vmem:[#allocation6 + $0x124] sm:$0xf]  ;;  %v3340_v45 = vor.u32 %v4367_v34, %v3337_v35 }
  0x6d   :  { %1799 = vmatpush.bf16.msra.mxu0 %v2972_v24  ;;  %v3065_v46 = vld [vmem:[#allocation6 + $0x130] sm:$0xf0]  ;;  %v4331_v48 = vld [vmem:[#allocation6 + $0x224] sm:$0xf]  ;;  %v2940_v52 = vor.u32 %v4267_v40, %v2937_v41 }
  0x6e   :  { %1813 = vmatpush.bf16.msra.mxu1 %v3100_v25  ;;  %v3193_v49 = vld [vmem:[#allocation6 + $0x230] sm:$0xf0]  ;;  %v4363_v50 = vld [vmem:[#allocation6 + $0x324] sm:$0xf]  ;;  %v3068_v55 = vor.u32 %v4299_v42, %v3065_v46 }
  0x6f   :  { %1827 = vmatpush.bf16.msra.mxu2 %v3228_v26  ;;  %v3321_v51 = vld [vmem:[#allocation6 + $0x330] sm:$0xf0]  ;;  %v4263_v53 = vld [vmem:[#allocation6 + $0x4] sm:$0xf]  ;;  %v3196_v56 = vor.u32 %v4331_v48, %v3193_v49 }
  0x70   :  { %1841 = vmatpush.bf16.msra.mxu3 %v3356_v30  ;;  %v2921_v54 = vld [vmem:[#allocation6 + $0x10] sm:$0xf0]  ;;  %v4295_v57 = vld [vmem:[#allocation6 + $0x104] sm:$0xf]  ;;  %v3324_v61 = vor.u32 %v4363_v50, %v3321_v51 }
  0x71   :  { %1800 = vmatpush.bf16.msra.mxu0 %v2956_v36  ;;  %v3049_v59 = vld [vmem:[#allocation6 + $0x110] sm:$0xf0]  ;;  %v4327_v60 = vld [vmem:[#allocation6 + $0x204] sm:$0xf]  ;;  %v2924_v5 = vor.u32 %v4263_v53, %v2921_v54 }
  0x72   :  { %1814 = vmatpush.bf16.msra.mxu1 %v3084_v37  ;;  %v3177_v62 = vld [vmem:[#allocation6 + $0x210] sm:$0xf0]  ;;  %v4359_v63 = vld [vmem:[#allocation6 + $0x304] sm:$0xf]  ;;  %v3052_v9 = vor.u32 %v4295_v57, %v3049_v59 }
  0x73   :  { %1828 = vmatpush.bf16.msra.mxu2 %v3212_v38  ;;  %v3305_v0 = vld [vmem:[#allocation6 + $0x310] sm:$0xf0]  ;;  %v4419_v2 = vld [vmem:[#allocation6 + $0x4e4] sm:$0xf]  ;;  %v3180_v11 = vor.u32 %v4327_v60, %v3177_v62 }
  0x74   :  { %1842 = vmatpush.bf16.msra.mxu3 %v3340_v45  ;;  %v3545_v3 = vld [vmem:[#allocation6 + $0x4f0] sm:$0xf0]  ;;  %v4451_v4 = vld [vmem:[#allocation6 + $0x5e4] sm:$0xf]  ;;  %v3308_v14 = vor.u32 %v4359_v63, %v3305_v0 }
  0x75   :  { %1801 = vmatpush.bf16.msra.mxu0 %v2940_v52  ;;  %v3673_v6 = vld [vmem:[#allocation6 + $0x5f0] sm:$0xf0]  ;;  %v4483_v7 = vld [vmem:[#allocation6 + $0x6e4] sm:$0xf]  ;;  %v3548_v15 = vor.u32 %v4419_v2, %v3545_v3 }
  0x76   :  { %v3801_v8 = vld [vmem:[#allocation6 + $0x6f0] sm:$0xf0]  ;;  %1815 = vmatpush.bf16.msra.mxu1 %v3068_v55  ;;  %v4515_v12 = vld [vmem:[#allocation6 + $0x7e4] sm:$0xf]  ;;  %v3676_v16 = vor.u32 %v4451_v4, %v3673_v6 }
  0x77   :  { %1829 = vmatpush.bf16.msra.mxu2 %v3196_v56  ;;  %v3929_v13 = vld [vmem:[#allocation6 + $0x7f0] sm:$0xf0]  ;;  %v3804_v18 = vor.u32 %v4483_v7, %v3801_v8  ;;  %v4415_v19 = vld [vmem:[#allocation6 + $0x4c4] sm:$0xf] }
  0x78   :  { %1843 = vmatpush.bf16.msra.mxu3 %v3324_v61  ;;  %v3529_v20 = vld [vmem:[#allocation6 + $0x4d0] sm:$0xf0]  ;;  %v4447_v21 = vld [vmem:[#allocation6 + $0x5c4] sm:$0xf]  ;;  %v3932_v22 = vor.u32 %v4515_v12, %v3929_v13 }
  0x79   :  { %1802 = vmatpush.bf16.msra.mxu0 %v2924_v5  ;;  %v3657_v23 = vld [vmem:[#allocation6 + $0x5d0] sm:$0xf0]  ;;  %v4479_v24 = vld [vmem:[#allocation6 + $0x6c4] sm:$0xf]  ;;  %v3532_v28 = vor.u32 %v4415_v19, %v3529_v20 }
  0x7a   :  { %v3785_v25 = vld [vmem:[#allocation6 + $0x6d0] sm:$0xf0]  ;;  %1816 = vmatpush.bf16.msra.mxu1 %v3052_v9  ;;  %v4511_v26 = vld [vmem:[#allocation6 + $0x7c4] sm:$0xf]  ;;  %v3660_v29 = vor.u32 %v4447_v21, %v3657_v23 }
  0x7b   :  { %1830 = vmatpush.bf16.msra.mxu2 %v3180_v11  ;;  %v3913_v27 = vld [vmem:[#allocation6 + $0x7d0] sm:$0xf0]  ;;  %v3788_v30 = vor.u32 %v4479_v24, %v3785_v25  ;;  %v4411_v31 = vld [vmem:[#allocation6 + $0x4a4] sm:$0xf] }
  0x7c   :  { %1844 = vmatpush.bf16.msra.mxu3 %v3308_v14  ;;  %v3513_v32 = vld [vmem:[#allocation6 + $0x4b0] sm:$0xf0]  ;;  %v4443_v33 = vld [vmem:[#allocation6 + $0x5a4] sm:$0xf]  ;;  %v3916_v34 = vor.u32 %v4511_v26, %v3913_v27  ;;  %1803 = vmatmul.bf16.vlgmr.msra.gmra.mxu0 %v4844_v58 }
  0x7d   :  { %1851 = vmatpush.bf16.msrb.mxu0 %v3548_v15  ;;  %v3641_v35 = vld [vmem:[#allocation6 + $0x5b0] sm:$0xf0]  ;;  %v4475_v36 = vld [vmem:[#allocation6 + $0x6a4] sm:$0xf]  ;;  %1817 = vmatmul.bf16.vlgmr.msra.gmra.mxu1 %v4850_v10  ;;  %v3516_v41 = vor.u32 %v4411_v31, %v3513_v32 }
  0x7e   :  { %1865 = vmatpush.bf16.msrb.mxu1 %v3676_v16  ;;  %v3769_v37 = vld [vmem:[#allocation6 + $0x6b0] sm:$0xf0]  ;;  %v4507_v38 = vld [vmem:[#allocation6 + $0x7a4] sm:$0xf]  ;;  %1831 = vmatmul.bf16.vlgmr.msra.gmra.mxu2 %v4846_v1  ;;  %v3644_v42 = vor.u32 %v4443_v33, %v3641_v35 }
  0x7f   :  { %1879 = vmatpush.bf16.msrb.mxu2 %v3804_v18  ;;  %v3897_v40 = vld [vmem:[#allocation6 + $0x7b0] sm:$0xf0]  ;;  %1845 = vmatmul.bf16.vlgmr.msra.gmra.mxu3 %v4852_v17  ;;  %v3772_v45 = vor.u32 %v4475_v36, %v3769_v37  ;;  %v4407_v46 = vld [vmem:[#allocation6 + $0x484] sm:$0xf] }
  0x80   :  { %1893 = vmatpush.bf16.msrb.mxu3 %v3932_v22  ;;  %v3497_v48 = vld [vmem:[#allocation6 + $0x490] sm:$0xf0]  ;;  %v4439_v49 = vld [vmem:[#allocation6 + $0x584] sm:$0xf]  ;;  %v3900_v50 = vor.u32 %v4507_v38, %v3897_v40 }
  0x81   :  { %1852 = vmatpush.bf16.msrb.mxu0 %v3532_v28  ;;  %v3625_v51 = vld [vmem:[#allocation6 + $0x590] sm:$0xf0]  ;;  %v4471_v52 = vld [vmem:[#allocation6 + $0x684] sm:$0xf]  ;;  %v3500_v56 = vor.u32 %v4407_v46, %v3497_v48  ;;  %v3039_v48 = vld [vmem:[#allocation6 + $0xe8] sm:$0xf] }
  0x82   :  { %1866 = vmatpush.bf16.msrb.mxu1 %v3660_v29  ;;  %v3753_v53 = vld [vmem:[#allocation6 + $0x690] sm:$0xf0]  ;;  %v4503_v54 = vld [vmem:[#allocation6 + $0x784] sm:$0xf]  ;;  %v3628_v57 = vor.u32 %v4439_v49, %v3625_v51  ;;  %v4294_v49 = vld [vmem:[#allocation6 + $0xf4] sm:$0xf0] }
  0x83   :  { %1880 = vmatpush.bf16.msrb.mxu2 %v3788_v30  ;;  %v3881_v55 = vld [vmem:[#allocation6 + $0x790] sm:$0xf0]  ;;  %v3756_v59 = vor.u32 %v4471_v52, %v3753_v53  ;;  %v4403_v60 = vld [vmem:[#allocation6 + $0x464] sm:$0xf]  ;;  %v4326_v52 = vld [vmem:[#allocation6 + $0x1f4] sm:$0xf0] }
  0x84   :  { %1894 = vmatpush.bf16.msrb.mxu3 %v3916_v34  ;;  %v3481_v61 = vld [vmem:[#allocation6 + $0x470] sm:$0xf0]  ;;  %v4435_v62 = vld [vmem:[#allocation6 + $0x564] sm:$0xf]  ;;  %v3884_v63 = vor.u32 %v4503_v54, %v3881_v55  ;;  %v3295_v53 = vld [vmem:[#allocation6 + $0x2e8] sm:$0xf] }
  0x85   :  { %1853 = vmatpush.bf16.msrb.mxu0 %v3516_v41  ;;  %v3609_v0 = vld [vmem:[#allocation6 + $0x570] sm:$0xf0]  ;;  %v4467_v2 = vld [vmem:[#allocation6 + $0x664] sm:$0xf]  ;;  %v3484_v6 = vor.u32 %v4403_v60, %v3481_v61  ;;  %v4358_v54 = vld [vmem:[#allocation6 + $0x2f4] sm:$0xf0]  ;;  %v3040_v61 = vor.u32 %v4294_v49, %v3039_v48 }
  0x86   :  { %1867 = vmatpush.bf16.msrb.mxu1 %v3644_v42  ;;  %v3737_v3 = vld [vmem:[#allocation6 + $0x670] sm:$0xf0]  ;;  %v4499_v4 = vld [vmem:[#allocation6 + $0x764] sm:$0xf]  ;;  %v3612_v7 = vor.u32 %v4435_v62, %v3609_v0  ;;  %v3023_v0 = vld [vmem:[#allocation6 + $0xc8] sm:$0xf] }
  0x87   :  { %1881 = vmatpush.bf16.msrb.mxu2 %v3772_v45  ;;  %v3865_v5 = vld [vmem:[#allocation6 + $0x770] sm:$0xf0]  ;;  %v3740_v8 = vor.u32 %v4467_v2, %v3737_v3  ;;  %v4399_v9 = vld [vmem:[#allocation6 + $0x444] sm:$0xf]  ;;  %v4290_v2 = vld [vmem:[#allocation6 + $0xd4] sm:$0xf0] }
  0x88   :  { %1895 = vmatpush.bf16.msrb.mxu3 %v3900_v50  ;;  %v3465_v11 = vld [vmem:[#allocation6 + $0x450] sm:$0xf0]  ;;  %v4431_v12 = vld [vmem:[#allocation6 + $0x544] sm:$0xf]  ;;  %v3868_v13 = vor.u32 %v4499_v4, %v3865_v5  ;;  %v3167_v50 = vld [vmem:[#allocation6 + $0x1e8] sm:$0xf] }
  0x89   :  { %1854 = vmatpush.bf16.msrb.mxu0 %v3500_v56  ;;  %v3593_v14 = vld [vmem:[#allocation6 + $0x550] sm:$0xf0]  ;;  %v4463_v15 = vld [vmem:[#allocation6 + $0x644] sm:$0xf]  ;;  %v3468_v20 = vor.u32 %v4399_v9, %v3465_v11  ;;  %v3168_v62 = vor.u32 %v4326_v52, %v3167_v50  ;;  %v3151_v3 = vld [vmem:[#allocation6 + $0x1c8] sm:$0xf]  ;;  %v3024_v11 = vor.u32 %v4290_v2, %v3023_v0 }
  0x8a   :  { %1868 = vmatpush.bf16.msrb.mxu1 %v3628_v57  ;;  %v3721_v16 = vld [vmem:[#allocation6 + $0x650] sm:$0xf0]  ;;  %v4495_v18 = vld [vmem:[#allocation6 + $0x744] sm:$0xf]  ;;  %v3596_v21 = vor.u32 %v4431_v12, %v3593_v14  ;;  %v3423_v57 = vld [vmem:[#allocation6 + $0x3e8] sm:$0xf] }
  0x8b   :  { %1882 = vmatpush.bf16.msrb.mxu2 %v3756_v59  ;;  %v3849_v19 = vld [vmem:[#allocation6 + $0x750] sm:$0xf0]  ;;  %v3724_v22 = vor.u32 %v4463_v15, %v3721_v16  ;;  %v4395_v23 = vld [vmem:[#allocation6 + $0x424] sm:$0xf]  ;;  %v4390_v59 = vld [vmem:[#allocation6 + $0x3f4] sm:$0xf0] }
  0x8c   :  { %1896 = vmatpush.bf16.msrb.mxu3 %v3884_v63  ;;  %v3449_v24 = vld [vmem:[#allocation6 + $0x430] sm:$0xf0]  ;;  %v4427_v25 = vld [vmem:[#allocation6 + $0x524] sm:$0xf]  ;;  %v3852_v26 = vor.u32 %v4495_v18, %v3849_v19  ;;  %v3296_v63 = vor.u32 %v4358_v54, %v3295_v53  ;;  %v3424_v4 = vor.u32 %v4390_v59, %v3423_v57  ;;  %v4322_v5 = vld [vmem:[#allocation6 + $0x1d4] sm:$0xf0] }
  0x8d   :  { %1855 = vmatpush.bf16.msrb.mxu0 %v3484_v6  ;;  %v3577_v27 = vld [vmem:[#allocation6 + $0x530] sm:$0xf0]  ;;  %v4459_v28 = vld [vmem:[#allocation6 + $0x624] sm:$0xf]  ;;  %v3452_v32 = vor.u32 %v4395_v23, %v3449_v24  ;;  %v3279_v6 = vld [vmem:[#allocation6 + $0x2c8] sm:$0xf]  ;;  %v3152_v12 = vor.u32 %v4322_v5, %v3151_v3 }
  0x8e   :  { %1869 = vmatpush.bf16.msrb.mxu1 %v3612_v7  ;;  %v3705_v29 = vld [vmem:[#allocation6 + $0x630] sm:$0xf0]  ;;  %v4491_v30 = vld [vmem:[#allocation6 + $0x724] sm:$0xf]  ;;  %v3580_v35 = vor.u32 %v4427_v25, %v3577_v27  ;;  %v4354_v7 = vld [vmem:[#allocation6 + $0x2d4] sm:$0xf0] }
  0x8f   :  { %1883 = vmatpush.bf16.msrb.mxu2 %v3740_v8  ;;  %v3833_v31 = vld [vmem:[#allocation6 + $0x730] sm:$0xf0]  ;;  %v4391_v33 = vld [vmem:[#allocation6 + $0x404] sm:$0xf]  ;;  %v3708_v36 = vor.u32 %v4459_v28, %v3705_v29  ;;  %v3407_v8 = vld [vmem:[#allocation6 + $0x3c8] sm:$0xf] }
  0x90   :  { %1897 = vmatpush.bf16.msrb.mxu3 %v3868_v13  ;;  %v3433_v34 = vld [vmem:[#allocation6 + $0x410] sm:$0xf0]  ;;  %v4423_v37 = vld [vmem:[#allocation6 + $0x504] sm:$0xf]  ;;  %v3836_v41 = vor.u32 %v4491_v30, %v3833_v31  ;;  %v4386_v9 = vld [vmem:[#allocation6 + $0x3d4] sm:$0xf0]  ;;  %v3280_v13 = vor.u32 %v4354_v7, %v3279_v6 }
  0x91   :  { %1856 = vmatpush.bf16.msrb.mxu0 %v3468_v20  ;;  %v3561_v38 = vld [vmem:[#allocation6 + $0x510] sm:$0xf0]  ;;  %v4455_v40 = vld [vmem:[#allocation6 + $0x604] sm:$0xf]  ;;  %v3436_v51 = vor.u32 %v4391_v33, %v3433_v34  ;;  %v3007_v14 = vld [vmem:[#allocation6 + $0xa8] sm:$0xf]  ;;  %v3408_v18 = vor.u32 %v4386_v9, %v3407_v8 }
  0x92   :  { %1870 = vmatpush.bf16.msrb.mxu1 %v3596_v21  ;;  %v3689_v42 = vld [vmem:[#allocation6 + $0x610] sm:$0xf0]  ;;  %v4487_v45 = vld [vmem:[#allocation6 + $0x704] sm:$0xf]  ;;  %v3564_v55 = vor.u32 %v4423_v37, %v3561_v38  ;;  %v4286_v15 = vld [vmem:[#allocation6 + $0xb4] sm:$0xf0] }
  0x93   :  { %1884 = vmatpush.bf16.msrb.mxu2 %v3724_v22  ;;  %v3817_v46 = vld [vmem:[#allocation6 + $0x710] sm:$0xf0]  ;;  %v3692_v56 = vor.u32 %v4455_v40, %v3689_v42  ;;  %v3135_v16 = vld [vmem:[#allocation6 + $0x1a8] sm:$0xf]  ;;  %v4318_v19 = vld [vmem:[#allocation6 + $0x1b4] sm:$0xf0]  ;;  %v3008_v24 = vor.u32 %v4286_v15, %v3007_v14 }
  0x94   :  { %1898 = vmatpush.bf16.msrb.mxu3 %v3852_v26  ;;  %v3820_v60 = vor.u32 %v4487_v45, %v3817_v46  ;;  %v3263_v20 = vld [vmem:[#allocation6 + $0x2a8] sm:$0xf]  ;;  %v4350_v21 = vld [vmem:[#allocation6 + $0x2b4] sm:$0xf0]  ;;  %v3136_v25 = vor.u32 %v4318_v19, %v3135_v16 }
  0x95   :  { %1857 = vmatpush.bf16.msrb.mxu0 %v3452_v32  ;;  %v3391_v22 = vld [vmem:[#allocation6 + $0x3a8] sm:$0xf]  ;;  %v4382_v23 = vld [vmem:[#allocation6 + $0x3b4] sm:$0xf0]  ;;  %v3264_v26 = vor.u32 %v4350_v21, %v3263_v20 }
  0x96   :  { %1871 = vmatpush.bf16.msrb.mxu1 %v3580_v35  ;;  %v2991_v27 = vld [vmem:[#allocation6 + $0x88] sm:$0xf]  ;;  %v4282_v28 = vld [vmem:[#allocation6 + $0x94] sm:$0xf0]  ;;  %v3392_v30 = vor.u32 %v4382_v23, %v3391_v22 }
  0x97   :  { %1885 = vmatpush.bf16.msrb.mxu2 %v3708_v36  ;;  %v3119_v29 = vld [vmem:[#allocation6 + $0x188] sm:$0xf]  ;;  %v4314_v31 = vld [vmem:[#allocation6 + $0x194] sm:$0xf0]  ;;  %v2992_v36 = vor.u32 %v4282_v28, %v2991_v27 }
  0x98   :  { %1899 = vmatpush.bf16.msrb.mxu3 %v3836_v41  ;;  %v3247_v32 = vld [vmem:[#allocation6 + $0x288] sm:$0xf]  ;;  %v4346_v33 = vld [vmem:[#allocation6 + $0x294] sm:$0xf0]  ;;  %v3120_v37 = vor.u32 %v4314_v31, %v3119_v29 }
  0x99   :  { %1858 = vmatpush.bf16.msrb.mxu0 %v3436_v51  ;;  %v3375_v34 = vld [vmem:[#allocation6 + $0x388] sm:$0xf]  ;;  %v4378_v35 = vld [vmem:[#allocation6 + $0x394] sm:$0xf0]  ;;  %v3248_v38 = vor.u32 %v4346_v33, %v3247_v32 }
  0x9a   :  { %1872 = vmatpush.bf16.msrb.mxu1 %v3564_v55  ;;  %v2975_v40 = vld [vmem:[#allocation6 + $0x68] sm:$0xf]  ;;  %v4278_v41 = vld [vmem:[#allocation6 + $0x74] sm:$0xf0]  ;;  %v3376_v45 = vor.u32 %v4378_v35, %v3375_v34 }
  0x9b   :  { %1886 = vmatpush.bf16.msrb.mxu2 %v3692_v56  ;;  %v3103_v42 = vld [vmem:[#allocation6 + $0x168] sm:$0xf]  ;;  %v4310_v46 = vld [vmem:[#allocation6 + $0x174] sm:$0xf0]  ;;  %v2976_v52 = vor.u32 %v4278_v41, %v2975_v40 }
  0x9c   :  { %1900 = vmatpush.bf16.msrb.mxu3 %v3820_v60  ;;  %1859 = vmatmul.bf16.vlgmr.msrb.gmra.mxu0 %v4856_v39  ;;  %v3231_v48 = vld [vmem:[#allocation6 + $0x268] sm:$0xf]  ;;  %v4342_v49 = vld [vmem:[#allocation6 + $0x274] sm:$0xf0]  ;;  %v3104_v53 = vor.u32 %v4310_v46, %v3103_v42 }
  0x9d   :  { %1907 = vmatpush.bf16.msra.mxu0 %v3040_v61  ;;  %1873 = vmatmul.bf16.vlgmr.msrb.gmra.mxu1 %v4860_v44  ;;  %v3359_v50 = vld [vmem:[#allocation6 + $0x368] sm:$0xf]  ;;  %v4374_v51 = vld [vmem:[#allocation6 + $0x374] sm:$0xf0]  ;;  %v3232_v54 = vor.u32 %v4342_v49, %v3231_v48 }
  0x9e   :  { %1921 = vmatpush.bf16.msra.mxu1 %v3168_v62  ;;  %1887 = vmatmul.bf16.vlgmr.msrb.gmra.mxu2 %v4858_v43  ;;  %v2959_v55 = vld [vmem:[#allocation6 + $0x48] sm:$0xf]  ;;  %v4274_v56 = vld [vmem:[#allocation6 + $0x54] sm:$0xf0]  ;;  %v3360_v59 = vor.u32 %v4374_v51, %v3359_v50 }
  0x9f   :  { %1935 = vmatpush.bf16.msra.mxu2 %v3296_v63  ;;  %1901 = vmatmul.bf16.vlgmr.msrb.gmra.mxu3 %v4862_v47  ;;  %v3087_v57 = vld [vmem:[#allocation6 + $0x148] sm:$0xf]  ;;  %v4306_v60 = vld [vmem:[#allocation6 + $0x154] sm:$0xf0]  ;;  %v2960_v2 = vor.u32 %v4274_v56, %v2959_v55 }
  0xa0   :  { %1949 = vmatpush.bf16.msra.mxu3 %v3424_v4  ;;  %v3215_v61 = vld [vmem:[#allocation6 + $0x248] sm:$0xf]  ;;  %v4338_v62 = vld [vmem:[#allocation6 + $0x254] sm:$0xf0]  ;;  %v3088_v3 = vor.u32 %v4306_v60, %v3087_v57 }
  0xa1   :  { %1908 = vmatpush.bf16.msra.mxu0 %v3024_v11  ;;  %v3343_v63 = vld [vmem:[#allocation6 + $0x348] sm:$0xf]  ;;  %v4370_v0 = vld [vmem:[#allocation6 + $0x354] sm:$0xf0]  ;;  %v3216_v4 = vor.u32 %v4338_v62, %v3215_v61 }
  0xa2   :  { %1922 = vmatpush.bf16.msra.mxu1 %v3152_v12  ;;  %v2943_v5 = vld [vmem:[#allocation6 + $0x28] sm:$0xf]  ;;  %v4270_v6 = vld [vmem:[#allocation6 + $0x34] sm:$0xf0]  ;;  %v3344_v8 = vor.u32 %v4370_v0, %v3343_v63 }
  0xa3   :  { %1936 = vmatpush.bf16.msra.mxu2 %v3280_v13  ;;  %v3071_v7 = vld [vmem:[#allocation6 + $0x128] sm:$0xf]  ;;  %v4302_v9 = vld [vmem:[#allocation6 + $0x134] sm:$0xf0]  ;;  %v2944_v15 = vor.u32 %v4270_v6, %v2943_v5 }
  0xa4   :  { %1950 = vmatpush.bf16.msra.mxu3 %v3408_v18  ;;  %v3199_v11 = vld [vmem:[#allocation6 + $0x228] sm:$0xf]  ;;  %v4334_v12 = vld [vmem:[#allocation6 + $0x234] sm:$0xf0]  ;;  %v3072_v19 = vor.u32 %v4302_v9, %v3071_v7 }
  0xa5   :  { %1909 = vmatpush.bf16.msra.mxu0 %v3008_v24  ;;  %v3327_v13 = vld [vmem:[#allocation6 + $0x328] sm:$0xf]  ;;  %v4366_v14 = vld [vmem:[#allocation6 + $0x334] sm:$0xf0]  ;;  %v3200_v20 = vor.u32 %v4334_v12, %v3199_v11 }
  0xa6   :  { %1923 = vmatpush.bf16.msra.mxu1 %v3136_v25  ;;  %v2927_v16 = vld [vmem:[#allocation6 + $0x8] sm:$0xf]  ;;  %v4266_v18 = vld [vmem:[#allocation6 + $0x14] sm:$0xf0]  ;;  %v3328_v24 = vor.u32 %v4366_v14, %v3327_v13 }
  0xa7   :  { %1937 = vmatpush.bf16.msra.mxu2 %v3264_v26  ;;  %v3055_v21 = vld [vmem:[#allocation6 + $0x108] sm:$0xf]  ;;  %v4298_v22 = vld [vmem:[#allocation6 + $0x114] sm:$0xf0]  ;;  %v2928_v31 = vor.u32 %v4266_v18, %v2927_v16 }
  0xa8   :  { %1951 = vmatpush.bf16.msra.mxu3 %v3392_v30  ;;  %v3183_v23 = vld [vmem:[#allocation6 + $0x208] sm:$0xf]  ;;  %v4330_v25 = vld [vmem:[#allocation6 + $0x214] sm:$0xf0]  ;;  %v3056_v35 = vor.u32 %v4298_v22, %v3055_v21 }
  0xa9   :  { %1910 = vmatpush.bf16.msra.mxu0 %v2992_v36  ;;  %v3311_v26 = vld [vmem:[#allocation6 + $0x308] sm:$0xf]  ;;  %v4362_v27 = vld [vmem:[#allocation6 + $0x314] sm:$0xf0]  ;;  %v3184_v36 = vor.u32 %v4330_v25, %v3183_v23 }
  0xaa   :  { %1924 = vmatpush.bf16.msra.mxu1 %v3120_v37  ;;  %v3551_v28 = vld [vmem:[#allocation6 + $0x4e8] sm:$0xf]  ;;  %v4422_v29 = vld [vmem:[#allocation6 + $0x4f4] sm:$0xf0]  ;;  %v3312_v40 = vor.u32 %v4362_v27, %v3311_v26 }
  0xab   :  { %1938 = vmatpush.bf16.msra.mxu2 %v3248_v38  ;;  %v3679_v30 = vld [vmem:[#allocation6 + $0x5e8] sm:$0xf]  ;;  %v4454_v32 = vld [vmem:[#allocation6 + $0x5f4] sm:$0xf0]  ;;  %v3552_v41 = vor.u32 %v4422_v29, %v3551_v28 }
  0xac   :  { %1952 = vmatpush.bf16.msra.mxu3 %v3376_v45  ;;  %v3807_v33 = vld [vmem:[#allocation6 + $0x6e8] sm:$0xf]  ;;  %v4486_v34 = vld [vmem:[#allocation6 + $0x6f4] sm:$0xf0]  ;;  %v3680_v42 = vor.u32 %v4454_v32, %v3679_v30 }
  0xad   :  { %1911 = vmatpush.bf16.msra.mxu0 %v2976_v52  ;;  %v3935_v37 = vld [vmem:[#allocation6 + $0x7e8] sm:$0xf]  ;;  %v4518_v38 = vld [vmem:[#allocation6 + $0x7f4] sm:$0xf0]  ;;  %v3808_v45 = vor.u32 %v4486_v34, %v3807_v33 }
  0xae   :  { %1925 = vmatpush.bf16.msra.mxu1 %v3104_v53  ;;  %v3535_v46 = vld [vmem:[#allocation6 + $0x4c8] sm:$0xf]  ;;  %v4418_v48 = vld [vmem:[#allocation6 + $0x4d4] sm:$0xf0]  ;;  %v3936_v50 = vor.u32 %v4518_v38, %v3935_v37 }
  0xaf   :  { %1939 = vmatpush.bf16.msra.mxu2 %v3232_v54  ;;  %v3663_v49 = vld [vmem:[#allocation6 + $0x5c8] sm:$0xf]  ;;  %v4450_v51 = vld [vmem:[#allocation6 + $0x5d4] sm:$0xf0]  ;;  %v3536_v56 = vor.u32 %v4418_v48, %v3535_v46 }
  0xb0   :  { %1953 = vmatpush.bf16.msra.mxu3 %v3360_v59  ;;  %v3791_v52 = vld [vmem:[#allocation6 + $0x6c8] sm:$0xf]  ;;  %v4482_v53 = vld [vmem:[#allocation6 + $0x6d4] sm:$0xf0]  ;;  %v3664_v57 = vor.u32 %v4450_v51, %v3663_v49 }
  0xb1   :  { %1912 = vmatpush.bf16.msra.mxu0 %v2960_v2  ;;  %v3919_v54 = vld [vmem:[#allocation6 + $0x7c8] sm:$0xf]  ;;  %v4514_v55 = vld [vmem:[#allocation6 + $0x7d4] sm:$0xf0]  ;;  %v3792_v59 = vor.u32 %v4482_v53, %v3791_v52 }
  0xb2   :  { %1926 = vmatpush.bf16.msra.mxu1 %v3088_v3  ;;  %v3519_v60 = vld [vmem:[#allocation6 + $0x4a8] sm:$0xf]  ;;  %v4414_v61 = vld [vmem:[#allocation6 + $0x4b4] sm:$0xf0]  ;;  %v3920_v63 = vor.u32 %v4514_v55, %v3919_v54 }
  0xb3   :  { %1940 = vmatpush.bf16.msra.mxu2 %v3216_v4  ;;  %v3647_v62 = vld [vmem:[#allocation6 + $0x5a8] sm:$0xf]  ;;  %v4446_v0 = vld [vmem:[#allocation6 + $0x5b4] sm:$0xf0]  ;;  %v3520_v6 = vor.u32 %v4414_v61, %v3519_v60 }
  0xb4   :  { %1954 = vmatpush.bf16.msra.mxu3 %v3344_v8  ;;  %v3775_v2 = vld [vmem:[#allocation6 + $0x6a8] sm:$0xf]  ;;  %v4478_v3 = vld [vmem:[#allocation6 + $0x6b4] sm:$0xf0]  ;;  %v3648_v7 = vor.u32 %v4446_v0, %v3647_v62 }
  0xb5   :  { %1913 = vmatpush.bf16.msra.mxu0 %v2944_v15  ;;  %v3903_v4 = vld [vmem:[#allocation6 + $0x7a8] sm:$0xf]  ;;  %v4510_v5 = vld [vmem:[#allocation6 + $0x7b4] sm:$0xf0]  ;;  %v3776_v8 = vor.u32 %v4478_v3, %v3775_v2 }
  0xb6   :  { %1927 = vmatpush.bf16.msra.mxu1 %v3072_v19  ;;  %v3503_v9 = vld [vmem:[#allocation6 + $0x488] sm:$0xf]  ;;  %v4410_v11 = vld [vmem:[#allocation6 + $0x494] sm:$0xf0]  ;;  %v3904_v13 = vor.u32 %v4510_v5, %v3903_v4 }
  0xb7   :  { %1941 = vmatpush.bf16.msra.mxu2 %v3200_v20  ;;  %v3631_v12 = vld [vmem:[#allocation6 + $0x588] sm:$0xf]  ;;  %v4442_v14 = vld [vmem:[#allocation6 + $0x594] sm:$0xf0]  ;;  %v3504_v20 = vor.u32 %v4410_v11, %v3503_v9  ;;  %v4292_v11 = vld [vmem:[#allocation6 + $0xec] sm:$0xf] }
  0xb8   :  { %1955 = vmatpush.bf16.msra.mxu3 %v3328_v24  ;;  %v3759_v15 = vld [vmem:[#allocation6 + $0x688] sm:$0xf]  ;;  %v4474_v16 = vld [vmem:[#allocation6 + $0x694] sm:$0xf0]  ;;  %v3632_v21 = vor.u32 %v4442_v14, %v3631_v12  ;;  %v3041_v12 = vld [vmem:[#allocation6 + $0xf8] sm:$0xf0] }
  0xb9   :  { %1914 = vmatpush.bf16.msra.mxu0 %v2928_v31  ;;  %v3887_v18 = vld [vmem:[#allocation6 + $0x788] sm:$0xf]  ;;  %v4506_v19 = vld [vmem:[#allocation6 + $0x794] sm:$0xf0]  ;;  %v3760_v22 = vor.u32 %v4474_v16, %v3759_v15  ;;  %v3169_v15 = vld [vmem:[#allocation6 + $0x1f8] sm:$0xf0] }
  0xba   :  { %1928 = vmatpush.bf16.msra.mxu1 %v3056_v35  ;;  %v3487_v23 = vld [vmem:[#allocation6 + $0x468] sm:$0xf]  ;;  %v4406_v24 = vld [vmem:[#allocation6 + $0x474] sm:$0xf0]  ;;  %v3888_v26 = vor.u32 %v4506_v19, %v3887_v18  ;;  %v4356_v16 = vld [vmem:[#allocation6 + $0x2ec] sm:$0xf] }
  0xbb   :  { %1942 = vmatpush.bf16.msra.mxu2 %v3184_v36  ;;  %v3615_v25 = vld [vmem:[#allocation6 + $0x568] sm:$0xf]  ;;  %v4438_v27 = vld [vmem:[#allocation6 + $0x574] sm:$0xf0]  ;;  %v3488_v32 = vor.u32 %v4406_v24, %v3487_v23  ;;  %v3297_v18 = vld [vmem:[#allocation6 + $0x2f8] sm:$0xf0]  ;;  %v3044_v24 = vor.u32 %v4292_v11, %v3041_v12 }
  0xbc   :  { %1956 = vmatpush.bf16.msra.mxu3 %v3312_v40  ;;  %1915 = vmatmul.bf16.vlgmr.msra.gmra.mxu0 %v4844_v58  ;;  %v3743_v28 = vld [vmem:[#allocation6 + $0x668] sm:$0xf]  ;;  %v4470_v29 = vld [vmem:[#allocation6 + $0x674] sm:$0xf0]  ;;  %v3616_v33 = vor.u32 %v4438_v27, %v3615_v25  ;;  %v4288_v27 = vld [vmem:[#allocation6 + $0xcc] sm:$0xf] }
  0xbd   :  { %1963 = vmatpush.bf16.msrb.mxu0 %v3552_v41  ;;  %1929 = vmatmul.bf16.vlgmr.msra.gmra.mxu1 %v4850_v10  ;;  %v3871_v30 = vld [vmem:[#allocation6 + $0x768] sm:$0xf]  ;;  %v4502_v31 = vld [vmem:[#allocation6 + $0x774] sm:$0xf0]  ;;  %v3744_v34 = vor.u32 %v4470_v29, %v3743_v28  ;;  %v3025_v28 = vld [vmem:[#allocation6 + $0xd8] sm:$0xf0] }
  0xbe   :  { %1977 = vmatpush.bf16.msrb.mxu1 %v3680_v42  ;;  %1943 = vmatmul.bf16.vlgmr.msra.gmra.mxu2 %v4846_v1  ;;  %v3471_v35 = vld [vmem:[#allocation6 + $0x448] sm:$0xf]  ;;  %v4402_v36 = vld [vmem:[#allocation6 + $0x454] sm:$0xf0]  ;;  %v3872_v38 = vor.u32 %v4502_v31, %v3871_v30  ;;  %v4320_v29 = vld [vmem:[#allocation6 + $0x1cc] sm:$0xf] }
  0xbf   :  { %1991 = vmatpush.bf16.msrb.mxu2 %v3808_v45  ;;  %1957 = vmatmul.bf16.vlgmr.msra.gmra.mxu3 %v4852_v17  ;;  %v3599_v37 = vld [vmem:[#allocation6 + $0x548] sm:$0xf]  ;;  %v4434_v40 = vld [vmem:[#allocation6 + $0x554] sm:$0xf0]  ;;  %v3472_v48 = vor.u32 %v4402_v36, %v3471_v35  ;;  %v3153_v31 = vld [vmem:[#allocation6 + $0x1d8] sm:$0xf0]  ;;  %v3028_v36 = vor.u32 %v4288_v27, %v3025_v28 }
  0xc0   :  { %2005 = vmatpush.bf16.msrb.mxu3 %v3936_v50  ;;  %v3727_v41 = vld [vmem:[#allocation6 + $0x648] sm:$0xf]  ;;  %v4466_v42 = vld [vmem:[#allocation6 + $0x654] sm:$0xf0]  ;;  %v3600_v49 = vor.u32 %v4434_v40, %v3599_v37  ;;  %v3409_v35 = vld [vmem:[#allocation6 + $0x3d8] sm:$0xf0]  ;;  %v3156_v37 = vor.u32 %v4320_v29, %v3153_v31 }
  0xc1   :  { %1964 = vmatpush.bf16.msrb.mxu0 %v3536_v56  ;;  %v3855_v45 = vld [vmem:[#allocation6 + $0x748] sm:$0xf]  ;;  %v4498_v46 = vld [vmem:[#allocation6 + $0x754] sm:$0xf0]  ;;  %v3728_v50 = vor.u32 %v4466_v42, %v3727_v41  ;;  %v4284_v40 = vld [vmem:[#allocation6 + $0xac] sm:$0xf] }
  0xc2   :  { %1978 = vmatpush.bf16.msrb.mxu1 %v3664_v57  ;;  %v3455_v51 = vld [vmem:[#allocation6 + $0x428] sm:$0xf]  ;;  %v4398_v52 = vld [vmem:[#allocation6 + $0x434] sm:$0xf0]  ;;  %v3856_v54 = vor.u32 %v4498_v46, %v3855_v45  ;;  %v3009_v41 = vld [vmem:[#allocation6 + $0xb8] sm:$0xf0] }
  0xc3   :  { %1992 = vmatpush.bf16.msrb.mxu2 %v3792_v59  ;;  %v3583_v53 = vld [vmem:[#allocation6 + $0x528] sm:$0xf]  ;;  %v4430_v55 = vld [vmem:[#allocation6 + $0x534] sm:$0xf0]  ;;  %v3456_v61 = vor.u32 %v4398_v52, %v3455_v51  ;;  %v4316_v42 = vld [vmem:[#allocation6 + $0x1ac] sm:$0xf]  ;;  %v3012_v52 = vor.u32 %v4284_v40, %v3009_v41 }
  0xc4   :  { %2006 = vmatpush.bf16.msrb.mxu3 %v3920_v63  ;;  %v3711_v56 = vld [vmem:[#allocation6 + $0x628] sm:$0xf]  ;;  %v4462_v57 = vld [vmem:[#allocation6 + $0x634] sm:$0xf0]  ;;  %v3584_v0 = vor.u32 %v4430_v55, %v3583_v53  ;;  %v3137_v46 = vld [vmem:[#allocation6 + $0x1b8] sm:$0xf0] }
  0xc5   :  { %1965 = vmatpush.bf16.msrb.mxu0 %v3520_v6  ;;  %v3839_v59 = vld [vmem:[#allocation6 + $0x728] sm:$0xf]  ;;  %v4494_v60 = vld [vmem:[#allocation6 + $0x734] sm:$0xf0]  ;;  %v3712_v2 = vor.u32 %v4462_v57, %v3711_v56  ;;  %v3393_v51 = vld [vmem:[#allocation6 + $0x3b8] sm:$0xf0]  ;;  %v3140_v53 = vor.u32 %v4316_v42, %v3137_v46 }
  0xc6   :  { %1979 = vmatpush.bf16.msrb.mxu1 %v3648_v7  ;;  %v3439_v62 = vld [vmem:[#allocation6 + $0x408] sm:$0xf]  ;;  %v4394_v63 = vld [vmem:[#allocation6 + $0x414] sm:$0xf0]  ;;  %v3840_v6 = vor.u32 %v4494_v60, %v3839_v59  ;;  %v4280_v55 = vld [vmem:[#allocation6 + $0x8c] sm:$0xf] }
  0xc7   :  { %1993 = vmatpush.bf16.msrb.mxu2 %v3776_v8  ;;  %v3567_v3 = vld [vmem:[#allocation6 + $0x508] sm:$0xf]  ;;  %v4426_v4 = vld [vmem:[#allocation6 + $0x514] sm:$0xf0]  ;;  %v3440_v14 = vor.u32 %v4394_v63, %v3439_v62  ;;  %v2993_v56 = vld [vmem:[#allocation6 + $0x98] sm:$0xf0] }
  0xc8   :  { %2007 = vmatpush.bf16.msrb.mxu3 %v3904_v13  ;;  %v3695_v5 = vld [vmem:[#allocation6 + $0x608] sm:$0xf]  ;;  %v4458_v7 = vld [vmem:[#allocation6 + $0x614] sm:$0xf0]  ;;  %v4324_v13 = vld [vmem:[#allocation6 + $0x1ec] sm:$0xf]  ;;  %v3568_v19 = vor.u32 %v4426_v4, %v3567_v3  ;;  %v4884_v3 = vpop.f32.mrf.mxu0 }
  0xc9   :  { %1966 = vmatpush.bf16.msrb.mxu0 %v3504_v20  ;;  %v3823_v8 = vld [vmem:[#allocation6 + $0x708] sm:$0xf]  ;;  %v4490_v9 = vld [vmem:[#allocation6 + $0x714] sm:$0xf0]  ;;  %v3696_v20 = vor.u32 %v4458_v7, %v3695_v5  ;;  %v3172_v25 = vor.u32 %v4324_v13, %v3169_v15  ;;  %v4312_v57 = vld [vmem:[#allocation6 + $0x18c] sm:$0xf] }
  0xca   :  { %1980 = vmatpush.bf16.msrb.mxu1 %v3632_v21  ;;  %v4388_v21 = vld [vmem:[#allocation6 + $0x3ec] sm:$0xf]  ;;  %v3824_v23 = vor.u32 %v4490_v9, %v3823_v8  ;;  %v3121_v60 = vld [vmem:[#allocation6 + $0x198] sm:$0xf0]  ;;  %v4886_v9 = vpop.f32.mrf.mxu1 }
  0xcb   :  { %1994 = vmatpush.bf16.msrb.mxu2 %v3760_v22  ;;  %v3425_v22 = vld [vmem:[#allocation6 + $0x3f8] sm:$0xf0]  ;;  %v4376_v63 = vld [vmem:[#allocation6 + $0x38c] sm:$0xf]  ;;  %v3124_v4 = vor.u32 %v4312_v57, %v3121_v60 }
  0xcc   :  { %2008 = vmatpush.bf16.msrb.mxu3 %v3888_v26  ;;  %v3300_v26 = vor.u32 %v4356_v16, %v3297_v18  ;;  %v3428_v30 = vor.u32 %v4388_v21, %v3425_v22  ;;  %v3249_v62 = vld [vmem:[#allocation6 + $0x298] sm:$0xf0]  ;;  %v4308_v8 = vld [vmem:[#allocation6 + $0x16c] sm:$0xf] }
  0xcd   :  { %1967 = vmatpush.bf16.msrb.mxu0 %v3488_v32  ;;  %v4352_v32 = vld [vmem:[#allocation6 + $0x2cc] sm:$0xf]  ;;  %v2977_v7 = vld [vmem:[#allocation6 + $0x78] sm:$0xf0] }
  0xce   :  { %1981 = vmatpush.bf16.msrb.mxu1 %v3616_v33  ;;  %v3281_v33 = vld [vmem:[#allocation6 + $0x2d8] sm:$0xf0]  ;;  %v4340_v13 = vld [vmem:[#allocation6 + $0x26c] sm:$0xf] }
  0xcf   :  { %1995 = vmatpush.bf16.msrb.mxu2 %v3744_v34  ;;  %v4384_v34 = vld [vmem:[#allocation6 + $0x3cc] sm:$0xf]  ;;  %v3105_v12 = vld [vmem:[#allocation6 + $0x178] sm:$0xf0] }
  0xd0   :  { %2009 = vmatpush.bf16.msrb.mxu3 %v3872_v38  ;;  %v3284_v38 = vor.u32 %v4352_v32, %v3281_v33  ;;  %v3412_v45 = vor.u32 %v4384_v34, %v3409_v35  ;;  %v4372_v15 = vld [vmem:[#allocation6 + $0x36c] sm:$0xf]  ;;  %v3361_v16 = vld [vmem:[#allocation6 + $0x378] sm:$0xf0]  ;;  %v4890_v32 = vpop.f32.mrf.mxu3 }
  0xd1   :  { %1968 = vmatpush.bf16.msrb.mxu0 %v3472_v48  ;;  %v4348_v48 = vld [vmem:[#allocation6 + $0x2ac] sm:$0xf]  ;;  %v2961_v22 = vld [vmem:[#allocation6 + $0x58] sm:$0xf0] }
  0xd2   :  { %1982 = vmatpush.bf16.msrb.mxu1 %v3600_v49  ;;  %v3265_v49 = vld [vmem:[#allocation6 + $0x2b8] sm:$0xf0]  ;;  %v4272_v21 = vld [vmem:[#allocation6 + $0x4c] sm:$0xf] }
  0xd3   :  { %1996 = vmatpush.bf16.msrb.mxu2 %v3728_v50  ;;  %v4380_v50 = vld [vmem:[#allocation6 + $0x3ac] sm:$0xf]  ;;  %v3217_v27 = vld [vmem:[#allocation6 + $0x258] sm:$0xf0]  ;;  %v2964_v31 = vor.u32 %v4272_v21, %v2961_v22 }
  0xd4   :  { %2010 = vmatpush.bf16.msrb.mxu3 %v3856_v54  ;;  %v3268_v54 = vor.u32 %v4348_v48, %v3265_v49  ;;  %v3396_v59 = vor.u32 %v4380_v50, %v3393_v51  ;;  %v4368_v28 = vld [vmem:[#allocation6 + $0x34c] sm:$0xf]  ;;  %v3345_v29 = vld [vmem:[#allocation6 + $0x358] sm:$0xf0]  ;;  %v4894_v49 = vpop.f32.mrf.mxu1 }
  0xd5   :  { %1969 = vmatpush.bf16.msrb.mxu0 %v3456_v61  ;;  %v4344_v61 = vld [vmem:[#allocation6 + $0x28c] sm:$0xf]  ;;  %v3073_v40 = vld [vmem:[#allocation6 + $0x138] sm:$0xf0] }
  0xd6   :  { %1983 = vmatpush.bf16.msrb.mxu1 %v3584_v0  ;;  %v3377_v0 = vld [vmem:[#allocation6 + $0x398] sm:$0xf0]  ;;  %v3252_v5 = vor.u32 %v4344_v61, %v3249_v62  ;;  %v4268_v35 = vld [vmem:[#allocation6 + $0x2c] sm:$0xf] }
  0xd7   :  { %1997 = vmatpush.bf16.msrb.mxu2 %v3712_v2  ;;  %v2996_v2 = vor.u32 %v4280_v55, %v2993_v56  ;;  %v3380_v11 = vor.u32 %v4376_v63, %v3377_v0  ;;  %v4332_v41 = vld [vmem:[#allocation6 + $0x22c] sm:$0xf]  ;;  %v3201_v42 = vld [vmem:[#allocation6 + $0x238] sm:$0xf0] }
  0xd8   :  { %2011 = vmatpush.bf16.msrb.mxu3 %v3840_v6  ;;  %v4276_v6 = vld [vmem:[#allocation6 + $0x6c] sm:$0xf]  ;;  %v3329_v48 = vld [vmem:[#allocation6 + $0x338] sm:$0xf0] }
  0xd9   :  { %1970 = vmatpush.bf16.msrb.mxu0 %v3440_v14  ;;  %v3233_v14 = vld [vmem:[#allocation6 + $0x278] sm:$0xf0]  ;;  %v2980_v18 = vor.u32 %v4276_v6, %v2977_v7  ;;  %v4364_v46 = vld [vmem:[#allocation6 + $0x32c] sm:$0xf] }
  0xda   :  { %1984 = vmatpush.bf16.msrb.mxu1 %v3568_v19  ;;  %v3108_v19 = vor.u32 %v4308_v8, %v3105_v12  ;;  %v4264_v51 = vld [vmem:[#allocation6 + $0xc] sm:$0xf]  ;;  %v3057_v56 = vld [vmem:[#allocation6 + $0x118] sm:$0xf0] }
  0xdb   :  { %1998 = vmatpush.bf16.msrb.mxu2 %v3696_v20  ;;  %v3236_v20 = vor.u32 %v4340_v13, %v3233_v14  ;;  %v4296_v55 = vld [vmem:[#allocation6 + $0x10c] sm:$0xf]  ;;  %v3185_v60 = vld [vmem:[#allocation6 + $0x218] sm:$0xf0] }
  0xdc   :  { %2012 = vmatpush.bf16.msrb.mxu3 %v3824_v23  ;;  %1971 = vmatmul.bf16.vlgmr.msrb.gmra.mxu0 %v4856_v39  ;;  %v4304_v23 = vld [vmem:[#allocation6 + $0x14c] sm:$0xf]  ;;  %v3313_v62 = vld [vmem:[#allocation6 + $0x318] sm:$0xf0]  ;;  %v3060_v8 = vor.u32 %v4296_v55, %v3057_v56 }
  0xdd   :  { %2019 = vmatpush.bf16.msra.mxu0 %v3044_v24  ;;  %1985 = vmatmul.bf16.vlgmr.msrb.gmra.mxu1 %v4860_v44  ;;  %v3364_v24 = vor.u32 %v4372_v15, %v3361_v16  ;;  %v4328_v57 = vld [vmem:[#allocation6 + $0x20c] sm:$0xf]  ;;  %v3553_v0 = vld [vmem:[#allocation6 + $0x4f8] sm:$0xf0] }
  0xde   :  { %2033 = vmatpush.bf16.msra.mxu1 %v3172_v25  ;;  %1999 = vmatmul.bf16.vlgmr.msrb.gmra.mxu2 %v4858_v43  ;;  %v3089_v25 = vld [vmem:[#allocation6 + $0x158] sm:$0xf0]  ;;  %v4360_v61 = vld [vmem:[#allocation6 + $0x30c] sm:$0xf] }
  0xdf   :  { %2047 = vmatpush.bf16.msra.mxu2 %v3300_v26  ;;  %2013 = vmatmul.bf16.vlgmr.msrb.gmra.mxu3 %v4862_v47  ;;  %v4336_v26 = vld [vmem:[#allocation6 + $0x24c] sm:$0xf]  ;;  %v3092_v33 = vor.u32 %v4304_v23, %v3089_v25  ;;  %v3809_v7 = vld [vmem:[#allocation6 + $0x6f8] sm:$0xf0]  ;;  %v3316_v15 = vor.u32 %v4360_v61, %v3313_v62 }
  0xe0   :  { %2061 = vmatpush.bf16.msra.mxu3 %v3428_v30  ;;  %v4888_v30 = vpop.f32.mrf.mxu2  ;;  %v3220_v34 = vor.u32 %v4336_v26, %v3217_v27  ;;  %v4420_v63 = vld [vmem:[#allocation6 + $0x4ec] sm:$0xf]  ;;  %v3937_v13 = vld [vmem:[#allocation6 + $0x7f8] sm:$0xf0] }
  0xe1   :  { %2020 = vmatpush.bf16.msra.mxu0 %v3028_v36  ;;  %v2945_v36 = vld [vmem:[#allocation6 + $0x38] sm:$0xf0]  ;;  %v4484_v6 = vld [vmem:[#allocation6 + $0x6ec] sm:$0xf]  ;;  %v3556_v16 = vor.u32 %v4420_v63, %v3553_v0 }
  0xe2   :  { %2034 = vmatpush.bf16.msra.mxu1 %v3156_v37  ;;  %v4300_v37 = vld [vmem:[#allocation6 + $0x12c] sm:$0xf]  ;;  %v2948_v50 = vor.u32 %v4268_v35, %v2945_v36  ;;  %v3537_v22 = vld [vmem:[#allocation6 + $0x4d8] sm:$0xf0] }
  0xe3   :  { %2048 = vmatpush.bf16.msra.mxu2 %v3284_v38  ;;  %v3348_v38 = vor.u32 %v4368_v28, %v3345_v29  ;;  %v4516_v12 = vld [vmem:[#allocation6 + $0x7ec] sm:$0xf]  ;;  %v3665_v25 = vld [vmem:[#allocation6 + $0x5d8] sm:$0xf0] }
  0xe4   :  { %2062 = vmatpush.bf16.msra.mxu3 %v3412_v45  ;;  %v4892_v45 = vpop.f32.mrf.mxu0  ;;  %v4416_v21 = vld [vmem:[#allocation6 + $0x4cc] sm:$0xf]  ;;  %v3793_v27 = vld [vmem:[#allocation6 + $0x6d8] sm:$0xf0] }
  0xe5   :  { %2021 = vmatpush.bf16.msra.mxu0 %v3012_v52  ;;  %v2929_v52 = vld [vmem:[#allocation6 + $0x18] sm:$0xf0]  ;;  %v4448_v23 = vld [vmem:[#allocation6 + $0x5cc] sm:$0xf] }
  0xe6   :  { %2035 = vmatpush.bf16.msra.mxu1 %v3140_v53  ;;  %v3076_v53 = vor.u32 %v4300_v37, %v3073_v40  ;;  %v4480_v26 = vld [vmem:[#allocation6 + $0x6cc] sm:$0xf]  ;;  %v3668_v35 = vor.u32 %v4448_v23, %v3665_v25  ;;  %v3505_v56 = vld [vmem:[#allocation6 + $0x498] sm:$0xf0] }
  0xe7   :  { %2049 = vmatpush.bf16.msra.mxu2 %v3268_v54  ;;  %v3204_v54 = vor.u32 %v4332_v41, %v3201_v42  ;;  %v4512_v29 = vld [vmem:[#allocation6 + $0x7cc] sm:$0xf]  ;;  %v3796_v36 = vor.u32 %v4480_v26, %v3793_v27  ;;  %v3649_v42 = vld [vmem:[#allocation6 + $0x5b8] sm:$0xf0] }
  0xe8   :  { %2063 = vmatpush.bf16.msra.mxu3 %v3396_v59  ;;  %v3332_v59 = vor.u32 %v4364_v46, %v3329_v48  ;;  %v4896_v14 = vpop.f32.mrf.mxu2  ;;  %v4412_v37 = vld [vmem:[#allocation6 + $0x4ac] sm:$0xf]  ;;  %v3777_v48 = vld [vmem:[#allocation6 + $0x6b8] sm:$0xf0] }
  0xe9   :  { %2022 = vmatpush.bf16.msra.mxu0 %v2996_v2  ;;  %v4452_v2 = vld [vmem:[#allocation6 + $0x5ec] sm:$0xf]  ;;  %v3761_v61 = vld [vmem:[#allocation6 + $0x698] sm:$0xf0] }
  0xea   :  { %2036 = vmatpush.bf16.msra.mxu1 %v3124_v4  ;;  %v2932_v4 = vor.u32 %v4264_v51, %v2929_v52  ;;  %v4444_v40 = vld [vmem:[#allocation6 + $0x5ac] sm:$0xf]  ;;  %v3905_v51 = vld [vmem:[#allocation6 + $0x7b8] sm:$0xf0] }
  0xeb   :  { %2050 = vmatpush.bf16.msra.mxu2 %v3252_v5  ;;  %v3681_v5 = vld [vmem:[#allocation6 + $0x5f8] sm:$0xf0]  ;;  %v4476_v46 = vld [vmem:[#allocation6 + $0x6ac] sm:$0xf] }
  0xec   :  { %2064 = vmatpush.bf16.msra.mxu3 %v3380_v11  ;;  %v3188_v11 = vor.u32 %v4328_v57, %v3185_v60  ;;  %v4900_v28 = vpop.f32.mrf.mxu0  ;;  %v4408_v55 = vld [vmem:[#allocation6 + $0x48c] sm:$0xf]  ;;  %v3889_v63 = vld [vmem:[#allocation6 + $0x798] sm:$0xf0] }
  0xed   :  { %2023 = vmatpush.bf16.msra.mxu0 %v2980_v18  ;;  %v4898_v18 = vpop.f32.mrf.mxu3  ;;  %v4472_v60 = vld [vmem:[#allocation6 + $0x68c] sm:$0xf]  ;;  %v3601_v27 = vld [vmem:[#allocation6 + $0x558] sm:$0xf0] }
  0xee   :  { %2037 = vmatpush.bf16.msra.mxu1 %v3108_v19  ;;  %v3684_v19 = vor.u32 %v4452_v2, %v3681_v5  ;;  %v4404_v5 = vld [vmem:[#allocation6 + $0x46c] sm:$0xf] }
  0xef   :  { %2051 = vmatpush.bf16.msra.mxu2 %v3236_v20  ;;  %v3812_v20 = vor.u32 %v4484_v6, %v3809_v7  ;;  %v3489_v6 = vld [vmem:[#allocation6 + $0x478] sm:$0xf0]  ;;  %v4436_v7 = vld [vmem:[#allocation6 + $0x56c] sm:$0xf] }
  0xf0   :  { %2065 = vmatpush.bf16.msra.mxu3 %v3364_v24  ;;  %v3940_v24 = vor.u32 %v4516_v12, %v3937_v13  ;;  %v4908_v57 = vpop.f32.mrf.mxu2  ;;  %v3617_v12 = vld [vmem:[#allocation6 + $0x578] sm:$0xf0]  ;;  %v4468_v13 = vld [vmem:[#allocation6 + $0x66c] sm:$0xf] }
  0xf1   :  { %2024 = vmatpush.bf16.msra.mxu0 %v2964_v31  ;;  %v3921_v31 = vld [vmem:[#allocation6 + $0x7d8] sm:$0xf0]  ;;  %v4400_v23 = vld [vmem:[#allocation6 + $0x44c] sm:$0xf] }
  0xf2   :  { %2038 = vmatpush.bf16.msra.mxu1 %v3092_v33  ;;  %v4902_v33 = vpop.f32.mrf.mxu1  ;;  %v3924_v41 = vor.u32 %v4512_v29, %v3921_v31  ;;  %v4432_v25 = vld [vmem:[#allocation6 + $0x54c] sm:$0xf]  ;;  %v3729_v31 = vld [vmem:[#allocation6 + $0x658] sm:$0xf0] }
  0xf3   :  { %2052 = vmatpush.bf16.msra.mxu2 %v3220_v34  ;;  %v3540_v34 = vor.u32 %v4416_v21, %v3537_v22  ;;  %v3620_v21 = vor.u32 %v4436_v7, %v3617_v12  ;;  %v4464_v29 = vld [vmem:[#allocation6 + $0x64c] sm:$0xf]  ;;  %v3825_v7 = vld [vmem:[#allocation6 + $0x718] sm:$0xf0] }
  0xf4   :  { %2066 = vmatpush.bf16.msra.mxu3 %v3348_v38  ;;  %v3521_v38 = vld [vmem:[#allocation6 + $0x4b8] sm:$0xf0]  ;;  %v4912_v0 = vpop.f32.mrf.mxu0 }
  0xf5   :  { %2025 = vmatpush.bf16.msra.mxu0 %v2948_v50  ;;  %v4508_v50 = vld [vmem:[#allocation6 + $0x7ac] sm:$0xf]  ;;  %v3524_v52 = vor.u32 %v4412_v37, %v3521_v38  ;;  %v4910_v62 = vpop.f32.mrf.mxu3  ;;  %v4534_v12 = vld [vmem:[#allocation9 + $0x74] sm:$0xf0] }
  0xf6   :  { %2039 = vmatpush.bf16.msra.mxu1 %v3076_v53  ;;  %v3652_v53 = vor.u32 %v4444_v40, %v3649_v42  ;;  %v3604_v40 = vor.u32 %v4432_v25, %v3601_v27 }
  0xf7   :  { %2053 = vmatpush.bf16.msra.mxu2 %v3204_v54  ;;  %v3780_v54 = vor.u32 %v4476_v46, %v3777_v48  ;;  %v4396_v46 = vld [vmem:[#allocation6 + $0x42c] sm:$0xf]  ;;  %v3457_v48 = vld [vmem:[#allocation6 + $0x438] sm:$0xf0] }
  0xf8   :  { %2067 = vmatpush.bf16.msra.mxu3 %v3332_v59  ;;  %v3908_v59 = vor.u32 %v4508_v50, %v3905_v51  ;;  %v4428_v50 = vld [vmem:[#allocation6 + $0x52c] sm:$0xf] }
  0xf9   :  { %2026 = vmatpush.bf16.msra.mxu0 %v2932_v4  ;;  %v3764_v4 = vor.u32 %v4472_v60, %v3761_v61 }
  0xfa   :  { %2040 = vmatpush.bf16.msra.mxu1 %v3060_v8  ;;  %v4914_v8 = vpop.f32.mrf.mxu1 }
  0xfb   :  { %2054 = vmatpush.bf16.msra.mxu2 %v3188_v11 }
  0xfc   :  { %2068 = vmatpush.bf16.msra.mxu3 %v3316_v15  ;;  %2027 = vmatmul.bf16.vlgmr.msra.gmra.mxu0 %v4844_v58  ;;  %v4504_v58 = vld [vmem:[#allocation6 + $0x78c] sm:$0xf]  ;;  %v3745_v15 = vld [vmem:[#allocation6 + $0x678] sm:$0xf0]  ;;  %v1804_v42 = vpop.f32.mrf.mxu0 }
  0xfd   :  { %2075 = vmatpush.bf16.msrb.mxu0 %v3556_v16  ;;  %2041 = vmatmul.bf16.vlgmr.msra.gmra.mxu1 %v4850_v10  ;;  %v3508_v10 = vor.u32 %v4408_v55, %v3505_v56  ;;  %v3892_v11 = vor.u32 %v4504_v58, %v3889_v63  ;;  %v4500_v16 = vld [vmem:[#allocation6 + $0x76c] sm:$0xf]  ;;  %v3748_v22 = vor.u32 %v4468_v13, %v3745_v15  ;;  %v4918_v38 = vpop.f32.mrf.mxu3  ;;  %v3441_v58 = vld [vmem:[#allocation6 + $0x418] sm:$0xf0] }
  0xfe   :  { %2089 = vmatpush.bf16.msrb.mxu1 %v3684_v19  ;;  %2055 = vmatmul.bf16.vlgmr.msra.gmra.mxu2 %v4846_v1  ;;  %v4440_v1 = vld [vmem:[#allocation6 + $0x58c] sm:$0xf]  ;;  %v3873_v19 = vld [vmem:[#allocation6 + $0x778] sm:$0xf0]  ;;  %v1707_v13 = vadd.f32 %v4886_v9, %v4884_v3  ;;  %v3991_v3 = vld [vmem:[#allocation9 + $0x60] sm:$0xf] }
  0xff   :  { %2103 = vmatpush.bf16.msrb.mxu2 %v3812_v20  ;;  %2069 = vmatmul.bf16.vlgmr.msra.gmra.mxu3 %v4852_v17  ;;  %v3633_v17 = vld [vmem:[#allocation6 + $0x598] sm:$0xf0]  ;;  %v3492_v20 = vor.u32 %v4404_v5, %v3489_v6  ;;  %v3876_v26 = vor.u32 %v4500_v16, %v3873_v19  ;;  %v4492_v56 = vld [vmem:[#allocation6 + $0x72c] sm:$0xf]  ;;  %v4063_v16 = vld [vmem:[#allocation9 + $0xf0] sm:$0xf] }
 0x100   :  { %2117 = vmatpush.bf16.msrb.mxu3 %v3940_v24  ;;  %v3636_v2 = vor.u32 %v4440_v1, %v3633_v17  ;;  %v3473_v24 = vld [vmem:[#allocation6 + $0x458] sm:$0xf0]  ;;  %v4392_v17 = vld [vmem:[#allocation6 + $0x40c] sm:$0xf] }
 0x101   :  { %2076 = vmatpush.bf16.msrb.mxu0 %v3540_v34  ;;  %v4496_v34 = vld [vmem:[#allocation6 + $0x74c] sm:$0xf]  ;;  %v3476_v37 = vor.u32 %v4400_v23, %v3473_v24  ;;  %v3841_v1 = vld [vmem:[#allocation6 + $0x738] sm:$0xf0]  ;;  %v3444_v15 = vor.u32 %v4392_v17, %v3441_v58  ;;  %v1709_v24 = vadd.f32 %v4894_v49, %v4892_v45 }
 0x102   :  { %2090 = vmatpush.bf16.msrb.mxu1 %v3668_v35  ;;  %v3857_v35 = vld [vmem:[#allocation6 + $0x758] sm:$0xf0]  ;;  %v1818_v55 = vpop.f32.mrf.mxu1  ;;  %v4424_v63 = vld [vmem:[#allocation6 + $0x50c] sm:$0xf] }
 0x103   :  { %2104 = vmatpush.bf16.msrb.mxu2 %v3796_v36  ;;  %v4916_v36 = vpop.f32.mrf.mxu2  ;;  %v3860_v51 = vor.u32 %v4496_v34, %v3857_v35  ;;  %v3697_v5 = vld [vmem:[#allocation6 + $0x618] sm:$0xf0]  ;;  %v4488_v6 = vld [vmem:[#allocation6 + $0x70c] sm:$0xf]  ;;  %v1819_v27 = vadd.f32 %v1818_v55, %v1804_v42  ;;  %v1721_v34 = vadd.f32 %v4888_v30, %v1707_v13  ;;  %v4055_v35 = vld [vmem:[#allocation9 + $0xe0] sm:$0xf] }
 0x104   :  { %2118 = vmatpush.bf16.msrb.mxu3 %v3924_v41  ;;  %v3732_v41 = vor.u32 %v4464_v29, %v3729_v31  ;;  %v4550_v19 = vld [vmem:[#allocation9 + $0xf4] sm:$0xf0]  ;;  %v3828_v25 = vor.u32 %v4488_v6, %v3825_v7  ;;  %v1806_v31 = vpop.f32.mrf.mxu0  ;;  %v4532_v9 = vld [vmem:[#allocation9 + $0x64] sm:$0xf0]  ;;  %v3959_v13 = vld [vmem:[#allocation9 + $0x20] sm:$0xf] }
 0x105   :  { %2077 = vmatpush.bf16.msrb.mxu0 %v3524_v52  ;;  %v3585_v52 = vld [vmem:[#allocation6 + $0x538] sm:$0xf0]  ;;  %v1846_v23 = vpop.f32.mrf.mxu3  ;;  %v4064_v29 = vor.u32 %v4550_v19, %v4063_v16  ;;  %v3992_v45 = vor.u32 %v4532_v9, %v3991_v3  ;;  %v1735_v30 = vadd.f32 %v4890_v32, %v1721_v34  ;;  %v3951_v3 = vld [vmem:[#allocation9 + $0x10] sm:$0xf] }
 0x106   :  { %2091 = vmatpush.bf16.msrb.mxu1 %v3652_v53  ;;  %v4460_v53 = vld [vmem:[#allocation6 + $0x62c] sm:$0xf]  ;;  %v3588_v60 = vor.u32 %v4428_v50, %v3585_v52  ;;  %v4047_v50 = vld [vmem:[#allocation9 + $0xd0] sm:$0xf] }
 0x107   :  { %2105 = vmatpush.bf16.msrb.mxu2 %v3780_v54  ;;  %v3713_v54 = vld [vmem:[#allocation6 + $0x638] sm:$0xf0]  ;;  %v1749_v32 = vadd.f32 %v4900_v28, %v1735_v30 }
 0x108   :  { %2119 = vmatpush.bf16.msrb.mxu3 %v3908_v59  ;;  %v3460_v59 = vor.u32 %v4396_v46, %v3457_v48  ;;  %v3716_v61 = vor.u32 %v4460_v53, %v3713_v54  ;;  %v3983_v46 = vld [vmem:[#allocation9 + $0x50] sm:$0xf]  ;;  %v4530_v48 = vld [vmem:[#allocation9 + $0x54] sm:$0xf0] }
 0x109   :  { %2078 = vmatpush.bf16.msrb.mxu0 %v3508_v10  ;;  %v3569_v10 = vld [vmem:[#allocation6 + $0x518] sm:$0xf0]  ;;  %v3984_v52 = vor.u32 %v4530_v48, %v3983_v46  ;;  %v4119_v46 = vld [vmem:[#allocation9 + $0x160] sm:$0xf]  ;;  %v4564_v48 = vld [vmem:[#allocation9 + $0x164] sm:$0xf0] }
 0x10a   :  { %2092 = vmatpush.bf16.msrb.mxu1 %v3636_v2  ;;  %v3844_v2 = vor.u32 %v4492_v56, %v3841_v1  ;;  %v3975_v56 = vld [vmem:[#allocation9 + $0x40] sm:$0xf]  ;;  %v4528_v1 = vld [vmem:[#allocation9 + $0x44] sm:$0xf0]  ;;  %v4542_v28 = vld [vmem:[#allocation9 + $0xb4] sm:$0xf0] }
 0x10b   :  { %2106 = vmatpush.bf16.msrb.mxu2 %v3764_v4  ;;  %v4456_v4 = vld [vmem:[#allocation6 + $0x60c] sm:$0xf] }
 0x10c   :  { %2120 = vmatpush.bf16.msrb.mxu3 %v3892_v11  ;;  %v3999_v11 = vld [vmem:[#allocation9 + $0x70] sm:$0xf] }
 0x10d   :  { %2079 = vmatpush.bf16.msrb.mxu0 %v3492_v20  ;;  %v1832_v20 = vpop.f32.mrf.mxu2  ;;  %v1848_v55 = vpop.f32.mrf.mxu3 }
 0x10e   :  { %2093 = vmatpush.bf16.msrb.mxu1 %v3620_v21  ;;  %v3572_v21 = vor.u32 %v4424_v63, %v3569_v10  ;;  %v1833_v49 = vadd.f32 %v1832_v20, %v1819_v27  ;;  %v3967_v63 = vld [vmem:[#allocation9 + $0x30] sm:$0xf]  ;;  %v4526_v10 = vld [vmem:[#allocation9 + $0x34] sm:$0xf0]  ;;  %v4023_v20 = vld [vmem:[#allocation9 + $0xa0] sm:$0xf] }
 0x10f   :  { %2107 = vmatpush.bf16.msrb.mxu2 %v3748_v22  ;;  %v3700_v22 = vor.u32 %v4456_v4, %v3697_v5  ;;  %v4031_v5 = vld [vmem:[#allocation9 + $0xb0] sm:$0xf]  ;;  %v3968_v7 = vor.u32 %v4526_v10, %v3967_v63 }
 0x110   :  { %2121 = vmatpush.bf16.msrb.mxu3 %v3876_v26  ;;  %v4000_v26 = vor.u32 %v4534_v12, %v3999_v11  ;;  %v1847_v54 = vadd.f32 %v1846_v23, %v1833_v49  ;;  %v4032_v12 = vor.u32 %v4542_v28, %v4031_v5  ;;  %v4531_v5 = vld [vmem:[#allocation9 + $0x64] sm:$0xf]  ;;  %v3993_v28 = vld [vmem:[#allocation9 + $0x68] sm:$0xf0] }
 0x111   :  { %2080 = vmatpush.bf16.msrb.mxu0 %v3476_v37  ;;  %v4548_v37 = vld [vmem:[#allocation9 + $0xe4] sm:$0xf0] }
 0x112   :  { %2094 = vmatpush.bf16.msrb.mxu1 %v3604_v40  ;;  %v1820_v40 = vpop.f32.mrf.mxu1  ;;  %v4056_v42 = vor.u32 %v4548_v37, %v4055_v35 }
 0x113   :  { %2108 = vmatpush.bf16.msrb.mxu2 %v3732_v41  ;;  %v1723_v41 = vadd.f32 %v4896_v14, %v1709_v24  ;;  %v1821_v17 = vadd.f32 %v1820_v40, %v1806_v31  ;;  %v4015_v40 = vld [vmem:[#allocation9 + $0x90] sm:$0xf] }
 0x114   :  { %2122 = vmatpush.bf16.msrb.mxu3 %v3860_v51  ;;  %v4546_v51 = vld [vmem:[#allocation9 + $0xd4] sm:$0xf0] }
 0x115   :  { %2081 = vmatpush.bf16.msrb.mxu0 %v3460_v59  ;;  %v1737_v14 = vadd.f32 %v4898_v18, %v1723_v41  ;;  %v1834_v53 = vpop.f32.mrf.mxu2  ;;  %v4544_v59 = vld [vmem:[#allocation9 + $0xc4] sm:$0xf0]  ;;  %v4538_v41 = vld [vmem:[#allocation9 + $0x94] sm:$0xf0] }
 0x116   :  { %2095 = vmatpush.bf16.msrb.mxu1 %v3588_v60  ;;  %v1835_v6 = vadd.f32 %v1834_v53, %v1821_v17  ;;  %v4120_v53 = vor.u32 %v4564_v48, %v4119_v46  ;;  %v4554_v46 = vld [vmem:[#allocation9 + $0x114] sm:$0xf0]  ;;  %v4541_v48 = vld [vmem:[#allocation9 + $0xb4] sm:$0xf] }
 0x117   :  { %2109 = vmatpush.bf16.msrb.mxu2 %v3716_v61 }
 0x118   :  { %2123 = vmatpush.bf16.msrb.mxu3 %v3844_v2  ;;  %v1763_v2 = vadd.f32 %v4902_v33, %v1749_v32  ;;  %v4938_v33 = vld [vmem:[#allocation8] sm:$0xf] }
 0x119   :  { %2082 = vmatpush.bf16.msrb.mxu0 %v3444_v15  ;;  %v1860_v60 = vpop.f32.mrf.mxu0  ;;  %v4524_v15 = vld [vmem:[#allocation9 + $0x24] sm:$0xf0]  ;;  %v2160_v35 = vperm.slane %v4938_v33, 0 }
 0x11a   :  { %2096 = vmatpush.bf16.msrb.mxu1 %v3572_v21  ;;  %v1874_v18 = vpop.f32.mrf.mxu1  ;;  %v1861_v61 = vadd.f32 %v1860_v60, %v1847_v54  ;;  %v1777_v16 = vadd.f32 %v4908_v57, %v1763_v2  ;;  %v4540_v21 = vld [vmem:[#allocation9 + $0xa4] sm:$0xf0]  ;;  %v4522_v57 = vld [vmem:[#allocation9 + $0x14] sm:$0xf0] }
 0x11b   :  { %2110 = vmatpush.bf16.msrb.mxu2 %v3700_v22  ;;  %v4024_v31 = vor.u32 %v4540_v21, %v4023_v20  ;;  %v3952_v49 = vor.u32 %v4522_v57, %v3951_v3  ;;  %v4095_v21 = vld [vmem:[#allocation9 + $0x130] sm:$0xf]  ;;  %v4527_v3 = vld [vmem:[#allocation9 + $0x44] sm:$0xf]  ;;  %v3977_v57 = vld [vmem:[#allocation9 + $0x48] sm:$0xf0] }
 0x11c   :  { %2124 = vmatpush.bf16.msrb.mxu3 %v3828_v25  ;;  %2083 = vmatmul.bf16.vlgmr.msrb.gmra.mxu0 %v4856_v39  ;;  %v4048_v39 = vor.u32 %v4546_v51, %v4047_v50  ;;  %v1875_v11 = vadd.f32 %v1874_v18, %v1861_v61  ;;  %v4127_v25 = vld [vmem:[#allocation9 + $0x170] sm:$0xf]  ;;  %v1791_v34 = vadd.f32 %v4910_v62, %v1777_v16  ;;  %v4007_v62 = vld [vmem:[#allocation9 + $0x80] sm:$0xf]  ;;  %v4562_v18 = vld [vmem:[#allocation9 + $0x154] sm:$0xf0] }
 0x11d   :  { %2578 = vmatpush.bf16.msra.mxu0 %v4000_v26  ;;  %2097 = vmatmul.bf16.vlgmr.msrb.gmra.mxu1 %v4860_v44  ;;  %v1751_v44 = vadd.f32 %v4912_v0, %v1737_v14  ;;  %v4566_v26 = vld [vmem:[#allocation9 + $0x174] sm:$0xf0]  ;;  %v4016_v51 = vor.u32 %v4538_v41, %v4015_v40  ;;  %v4520_v14 = vld [vmem:[#allocation9 + $0x4] sm:$0xf0]  ;;  %v3980_v40 = vor.u32 %v4527_v3, %v3977_v57  ;;  %v4525_v41 = vld [vmem:[#allocation9 + $0x34] sm:$0xf] }
 0x11e   :  { %2592 = vmatpush.bf16.msra.mxu1 %v4064_v29  ;;  %2111 = vmatmul.bf16.vlgmr.msrb.gmra.mxu2 %v4858_v43  ;;  %v4039_v43 = vld [vmem:[#allocation9 + $0xc0] sm:$0xf]  ;;  %v4128_v9 = vor.u32 %v4566_v26, %v4127_v25  ;;  %v2168_v54 = vadd.f32 %v2160_v35, %v1791_v34  ;;  %v4545_v25 = vld [vmem:[#allocation9 + $0xd4] sm:$0xf]  ;;  %v4049_v26 = vld [vmem:[#allocation9 + $0xd8] sm:$0xf0] }
 0x11f   :  { %2125 = vmatmul.bf16.vlgmr.msrb.gmra.mxu3 %v4862_v47  ;;  %v3976_v47 = vor.u32 %v4528_v1, %v3975_v56  ;;  %v4040_v58 = vor.u32 %v4544_v59, %v4039_v43  ;;  %v1765_v4 = vadd.f32 %v4914_v8, %v1751_v44  ;;  %v1849_v8 = vadd.f32 %v1848_v55, %v1835_v6  ;;  %v4533_v55 = vld [vmem:[#allocation9 + $0x74] sm:$0xf]  ;;  %v4001_v56 = vld [vmem:[#allocation9 + $0x78] sm:$0xf0]  ;;  %v4041_v34 = vld [vmem:[#allocation9 + $0xc8] sm:$0xf0] }
 0x120   :  { %2606 = vmatpush.bf16.msra.mxu2 %v4128_v9  ;;  %v4549_v44 = vld [vmem:[#allocation9 + $0xf4] sm:$0xf]  ;;  %v4065_v43 = vld [vmem:[#allocation9 + $0xf8] sm:$0xf0]  ;;  %v4004_v63 = vor.u32 %v4533_v55, %v4001_v56  ;;  %v2176_v2 = vmax.f32 %v2168_v54, 0.0 }
 0x121   :  { %2579 = vmatpush.bf16.msra.mxu0 %v3992_v45  ;;  %v1779_v0 = vadd.f32 %v4916_v36, %v1765_v4  ;;  %v1888_v19 = vpop.f32.mrf.mxu2  ;;  %v1862_v22 = vpop.f32.mrf.mxu0  ;;  %v3960_v36 = vor.u32 %v4524_v15, %v3959_v13  ;;  %v4068_v4 = vor.u32 %v4549_v44, %v4065_v43  ;;  %v4560_v13 = vld [vmem:[#allocation9 + $0x144] sm:$0xf0]  ;;  %v4543_v9 = vld [vmem:[#allocation9 + $0xc4] sm:$0xf]  ;;  %v4025_v54 = vld [vmem:[#allocation9 + $0xa8] sm:$0xf0] }
 0x122   :  { %2593 = vmatpush.bf16.msra.mxu1 %v4056_v42  ;;  %v1902_v23 = vpop.f32.mrf.mxu3  ;;  %v1889_v27 = vadd.f32 %v1888_v19, %v1875_v11  ;;  %v1863_v29 = vadd.f32 %v1862_v22, %v1849_v8  ;;  %v1876_v37 = vpop.f32.mrf.mxu1  ;;  %v3943_v42 = vld [vmem:[#allocation9] sm:$0xf]  ;;  %v3996_v19 = vor.u32 %v4531_v5, %v3993_v28  ;;  %v4558_v8 = vld [vmem:[#allocation9 + $0x134] sm:$0xf0]  ;;  %v4552_v55 = vld [vmem:[#allocation9 + $0x104] sm:$0xf0] }
 0x123   :  { %v1793_v24 = vadd.f32 %v4918_v38, %v1779_v0  ;;  %v2161_v38 = vperm.slane %v4938_v33, 1  ;;  %v3944_v17 = vor.u32 %v4520_v14, %v3943_v42  ;;  %v4547_v0 = vld [vmem:[#allocation9 + $0xe4] sm:$0xf]  ;;  %v4079_v42 = vld [vmem:[#allocation9 + $0x110] sm:$0xf] }
 0x124   :  { %v1903_v30 = vadd.f32 %v1902_v23, %v1889_v27  ;;  %v1877_v50 = vadd.f32 %v1876_v37, %v1863_v29  ;;  %2607 = vmatpush.bf16.msra.mxu2 %v4120_v53  ;;  %v4529_v23 = vld [vmem:[#allocation9 + $0x54] sm:$0xf]  ;;  %v4096_v27 = vor.u32 %v4558_v8, %v4095_v21  ;;  %v4556_v37 = vld [vmem:[#allocation9 + $0x124] sm:$0xf0]  ;;  %v4539_v53 = vld [vmem:[#allocation9 + $0xa4] sm:$0xf] }
 0x125   :  { %2580 = vmatpush.bf16.msra.mxu0 %v3984_v52  ;;  %v2172_v45 = vadd.f32 %v2160_v35, %v1793_v24  ;;  %v4536_v52 = vld [vmem:[#allocation9 + $0x84] sm:$0xf0]  ;;  %v3985_v24 = vld [vmem:[#allocation9 + $0x58] sm:$0xf0]  ;;  %v4087_v35 = vld [vmem:[#allocation9 + $0x120] sm:$0xf]  ;;  %v4028_v43 = vor.u32 %v4539_v53, %v4025_v54 }
 0x126   :  { %2594 = vmatpush.bf16.msra.mxu1 %v4048_v39  ;;  %v4008_v60 = vor.u32 %v4536_v52, %v4007_v62  ;;  %v2169_v61 = vadd.f32 %v2161_v38, %v1903_v30  ;;  %v3988_v29 = vor.u32 %v4529_v23, %v3985_v24  ;;  %v4033_v30 = vld [vmem:[#allocation9 + $0xb8] sm:$0xf0]  ;;  %v4523_v62 = vld [vmem:[#allocation9 + $0x24] sm:$0xf]  ;;  %v3961_v52 = vld [vmem:[#allocation9 + $0x28] sm:$0xf0] }
 0x127   :  { %v2180_v59 = vmax.f32 %v2172_v45, 0.0  ;;  %v4044_v45 = vor.u32 %v4543_v9, %v4041_v34  ;;  %v4036_v14 = vor.u32 %v4541_v48, %v4033_v30  ;;  %v3964_v56 = vor.u32 %v4523_v62, %v3961_v52  ;;  %v4129_v44 = vld [vmem:[#allocation9 + $0x178] sm:$0xf0]  ;;  %v4519_v5 = vld [vmem:[#allocation9 + $0x4] sm:$0xf] }
 0x128   :  { %v2177_v15 = vmax.f32 %v2169_v61, 0.0  ;;  %v4017_v61 = vld [vmem:[#allocation9 + $0x98] sm:$0xf0]  ;;  %v3945_v28 = vld [vmem:[#allocation9 + $0x8] sm:$0xf0] }
 0x129   :  { %2581 = vmatpush.bf16.msra.mxu0 %v3976_v47  ;;  %v1890_v39 = vpop.f32.mrf.mxu2  ;;  %v4111_v47 = vld [vmem:[#allocation9 + $0x150] sm:$0xf]  ;;  %v4944_v11 = vpack.c.bf16 %v2180_v59, %v2176_v2  ;;  %v4521_v59 = vld [vmem:[#allocation9 + $0x14] sm:$0xf]  ;;  %v4121_v2 = vld [vmem:[#allocation9 + $0x168] sm:$0xf0] }
 0x12a   :  { %2595 = vmatpush.bf16.msra.mxu1 %v4040_v58  ;;  %v1891_v1 = vadd.f32 %v1890_v39, %v1877_v50  ;;  %v1904_v32 = vpop.f32.mrf.mxu3  ;;  %v4112_v10 = vor.u32 %v4562_v18, %v4111_v47  ;;  %v4080_v50 = vor.u32 %v4554_v46, %v4079_v42  ;;  %v4071_v39 = vld [vmem:[#allocation9 + $0x100] sm:$0xf]  ;;  %v4537_v18 = vld [vmem:[#allocation9 + $0x94] sm:$0xf]  ;;  %v4559_v23 = vld [vmem:[#allocation9 + $0x144] sm:$0xf] }
 0x12b   :  { %v4105_v24 = vld [vmem:[#allocation9 + $0x148] sm:$0xf0]  ;;  %v4555_v3 = vld [vmem:[#allocation9 + $0x124] sm:$0xf]  ;;  %v4582_v62 = vld [vmem:[#allocation9 + $0x1f4] sm:$0xf0] }
 0x12c   :  { %v1905_v58 = vadd.f32 %v1904_v32, %v1891_v1  ;;  %2608 = vmatpush.bf16.msra.mxu2 %v4112_v10  ;;  %v4072_v1 = vor.u32 %v4552_v55, %v4071_v39  ;;  %v4565_v32 = vld [vmem:[#allocation9 + $0x174] sm:$0xf]  ;;  %v4563_v10 = vld [vmem:[#allocation9 + $0x164] sm:$0xf]  ;;  %v4089_v9 = vld [vmem:[#allocation9 + $0x128] sm:$0xf0] }
 0x12d   :  { %2582 = vmatpush.bf16.msra.mxu0 %v3968_v7  ;;  %v4057_v7 = vld [vmem:[#allocation9 + $0xe8] sm:$0xf0] }
 0x12e   :  { %2596 = vmatpush.bf16.msra.mxu1 %v4032_v12  ;;  %v2173_v6 = vadd.f32 %v2161_v38, %v1905_v58  ;;  %v4103_v12 = vld [vmem:[#allocation9 + $0x140] sm:$0xf]  ;;  %v4060_v22 = vor.u32 %v4547_v0, %v4057_v7  ;;  %v4088_v38 = vor.u32 %v4556_v37, %v4087_v35  ;;  %v4535_v0 = vld [vmem:[#allocation9 + $0x84] sm:$0xf]  ;;  %v4009_v7 = vld [vmem:[#allocation9 + $0x88] sm:$0xf0]  ;;  %v4092_v35 = vor.u32 %v4555_v3, %v4089_v9 }
 0x12f   :  { %v4104_v20 = vor.u32 %v4560_v13, %v4103_v12  ;;  %v3948_v12 = vor.u32 %v4519_v5, %v3945_v28  ;;  %v4561_v13 = vld [vmem:[#allocation9 + $0x154] sm:$0xf]  ;;  %v4073_v30 = vld [vmem:[#allocation9 + $0x108] sm:$0xf0]  ;;  %v4193_v3 = vld [vmem:[#allocation9 + $0x1f8] sm:$0xf0] }
 0x130   :  { %v2181_v16 = vmax.f32 %v2173_v6, 0.0  ;;  %v4124_v6 = vor.u32 %v4563_v10, %v4121_v2  ;;  %v4167_v10 = vld [vmem:[#allocation9 + $0x1c0] sm:$0xf]  ;;  %v4576_v2 = vld [vmem:[#allocation9 + $0x1c4] sm:$0xf0] }
 0x131   :  { %2583 = vmatpush.bf16.msra.mxu0 %v3960_v36  ;;  %2609 = vmatpush.bf16.msra.mxu2 %v4104_v20  ;;  %v4168_v28 = vor.u32 %v4576_v2, %v4167_v10  ;;  %v4579_v9 = vld [vmem:[#allocation9 + $0x1e4] sm:$0xf] }
 0x132   :  { %2597 = vmatpush.bf16.msra.mxu1 %v4024_v31  ;;  %v4946_v36 = vpack.c.bf16 %v2181_v16, %v2177_v15  ;;  %v4052_v31 = vor.u32 %v4545_v25, %v4049_v26  ;;  %v4113_v15 = vld [vmem:[#allocation9 + $0x158] sm:$0xf0]  ;;  %v4012_v16 = vor.u32 %v4535_v0, %v4009_v7  ;;  %v4108_v26 = vor.u32 %v4559_v23, %v4105_v24  ;;  %v4159_v7 = vld [vmem:[#allocation9 + $0x1b0] sm:$0xf]  ;;  %v4570_v24 = vld [vmem:[#allocation9 + $0x194] sm:$0xf0] }
 0x133   :  { %v4116_v20 = vor.u32 %v4561_v13, %v4113_v15  ;;  %v4143_v23 = vld [vmem:[#allocation9 + $0x190] sm:$0xf] }
 0x135   :  { %2584 = vmatpush.bf16.msra.mxu0 %v3952_v49  ;;  %2610 = vmatpush.bf16.msra.mxu2 %v4096_v27  ;;  %v3969_v49 = vld [vmem:[#allocation9 + $0x38] sm:$0xf0] }
 0x136   :  { %2598 = vmatpush.bf16.msra.mxu1 %v4016_v51  ;;  %v3972_v51 = vor.u32 %v4525_v41, %v3969_v49  ;;  %v4553_v41 = vld [vmem:[#allocation9 + $0x114] sm:$0xf] }
 0x139   :  { %2585 = vmatpush.bf16.msra.mxu0 %v3944_v17  ;;  %2611 = vmatpush.bf16.msra.mxu2 %v4088_v38  ;;  %v3953_v17 = vld [vmem:[#allocation9 + $0x18] sm:$0xf0]  ;;  %v1916_v47 = vpop.f32.mrf.mxu0 }
 0x13a   :  { %2599 = vmatpush.bf16.msra.mxu1 %v4008_v60  ;;  %v4132_v60 = vor.u32 %v4565_v32, %v4129_v44  ;;  %v1930_v58 = vpop.f32.mrf.mxu1  ;;  %v4081_v38 = vld [vmem:[#allocation9 + $0x118] sm:$0xf0]  ;;  %v4183_v32 = vld [vmem:[#allocation9 + $0x1e0] sm:$0xf]  ;;  %v4580_v44 = vld [vmem:[#allocation9 + $0x1e4] sm:$0xf0] }
 0x13b   :  { %v1931_v8 = vadd.f32 %v1930_v58, %v1916_v47 }
 0x13c   :  { %2586 = vmatmul.bf16.vlgmr.msra.gmra.mxu0 %v4944_v11 }
 0x13d   :  { %2634 = vmatpush.bf16.msrb.mxu0 %v4004_v63  ;;  %2600 = vmatmul.bf16.vlgmr.msra.gmra.mxu1 %v4946_v36  ;;  %v3956_v63 = vor.u32 %v4521_v59, %v3953_v17  ;;  %v4184_v59 = vor.u32 %v4580_v44, %v4183_v32  ;;  %v4175_v17 = vld [vmem:[#allocation9 + $0x1d0] sm:$0xf]  ;;  %v4569_v44 = vld [vmem:[#allocation9 + $0x194] sm:$0xf] }
 0x13e   :  { %2648 = vmatpush.bf16.msrb.mxu1 %v4068_v4  ;;  %2612 = vmatpush.bf16.msra.mxu2 %v4080_v50  ;;  %v4020_v4 = vor.u32 %v4537_v18, %v4017_v61  ;;  %v4191_v50 = vld [vmem:[#allocation9 + $0x1f0] sm:$0xf]  ;;  %v2162_v18 = vperm.slane %v4938_v33, 2 }
 0x13f   :  { %v4192_v53 = vor.u32 %v4582_v62, %v4191_v50  ;;  %v4161_v50 = vld [vmem:[#allocation9 + $0x1b8] sm:$0xf0] }
 0x141   :  { %2635 = vmatpush.bf16.msrb.mxu0 %v3996_v19  ;;  %v1944_v19 = vpop.f32.mrf.mxu2  ;;  %2620 = vmatpush.bf16.msra.mxu3 %v4192_v53  ;;  %v4153_v53 = vld [vmem:[#allocation9 + $0x1a8] sm:$0xf0] }
 0x142   :  { %2649 = vmatpush.bf16.msrb.mxu1 %v4060_v22  ;;  %2613 = vmatpush.bf16.msra.mxu2 %v4072_v1  ;;  %v1958_v21 = vpop.f32.mrf.mxu3  ;;  %v1918_v22 = vpop.f32.mrf.mxu0  ;;  %v1945_v27 = vadd.f32 %v1944_v19, %v1931_v8  ;;  %v4572_v8 = vld [vmem:[#allocation9 + $0x1a4] sm:$0xf0] }
 0x143   :  { %v1932_v25 = vpop.f32.mrf.mxu1 }
 0x144   :  { %v1959_v37 = vadd.f32 %v1958_v21, %v1945_v27  ;;  %v4151_v21 = vld [vmem:[#allocation9 + $0x1a0] sm:$0xf]  ;;  %v4568_v27 = vld [vmem:[#allocation9 + $0x184] sm:$0xf0] }
 0x145   :  { %2636 = vmatpush.bf16.msrb.mxu0 %v3988_v29  ;;  %v4557_v29 = vld [vmem:[#allocation9 + $0x134] sm:$0xf]  ;;  %2621 = vmatpush.bf16.msra.mxu3 %v4184_v59 }
 0x146   :  { %2650 = vmatpush.bf16.msrb.mxu1 %v4052_v31  ;;  %2662 = vmatpush.bf16.msrb.mxu2 %v4132_v60  ;;  %v4097_v31 = vld [vmem:[#allocation9 + $0x138] sm:$0xf0]  ;;  %v4578_v60 = vld [vmem:[#allocation9 + $0x1d4] sm:$0xf0] }
 0x147   :  { %v4100_v57 = vor.u32 %v4557_v29, %v4097_v31  ;;  %v4176_v58 = vor.u32 %v4578_v60, %v4175_v17  ;;  %v4581_v31 = vld [vmem:[#allocation9 + $0x1f4] sm:$0xf] }
 0x149   :  { %2637 = vmatpush.bf16.msrb.mxu0 %v3980_v40  ;;  %v1946_v34 = vpop.f32.mrf.mxu2  ;;  %2622 = vmatpush.bf16.msra.mxu3 %v4176_v58  ;;  %v4137_v58 = vld [vmem:[#allocation9 + $0x188] sm:$0xf0] }
 0x14a   :  { %2651 = vmatpush.bf16.msrb.mxu1 %v4044_v45  ;;  %2663 = vmatpush.bf16.msrb.mxu2 %v4124_v6  ;;  %v1960_v40 = vpop.f32.mrf.mxu3  ;;  %v1933_v45 = vadd.f32 %v1932_v25, %v1918_v22  ;;  %v4152_v22 = vor.u32 %v4572_v8, %v4151_v21  ;;  %v4144_v25 = vor.u32 %v4570_v24, %v4143_v23 }
 0x14c   :  { %v1947_v48 = vadd.f32 %v1946_v34, %v1933_v45  ;;  %v4185_v34 = vld [vmem:[#allocation9 + $0x1e8] sm:$0xf0] }
 0x14d   :  { %2638 = vmatpush.bf16.msrb.mxu0 %v3972_v51  ;;  %2623 = vmatpush.bf16.msra.mxu3 %v4168_v28 }
 0x14e   :  { %2652 = vmatpush.bf16.msrb.mxu1 %v4036_v14  ;;  %2664 = vmatpush.bf16.msrb.mxu2 %v4116_v20  ;;  %v1961_v54 = vadd.f32 %v1960_v40, %v1947_v48 }
 0x151   :  { %2639 = vmatpush.bf16.msrb.mxu0 %v3964_v56 }
 0x152   :  { %2653 = vmatpush.bf16.msrb.mxu1 %v4028_v43  ;;  %2665 = vmatpush.bf16.msrb.mxu2 %v4108_v26  ;;  %v4135_v26 = vld [vmem:[#allocation9 + $0x180] sm:$0xf] }
 0x153   :  { %v4136_v29 = vor.u32 %v4568_v27, %v4135_v26  ;;  %v4590_v26 = vld [vmem:[#allocation11 + $0x38] sm:$0xff]  ;;  %v4589_v27 = vld [vmem:[#allocation11 + $0x30] sm:$0xff] }
 0x155   :  { %2640 = vmatpush.bf16.msrb.mxu0 %v3956_v63 }
 0x156   :  { %2654 = vmatpush.bf16.msrb.mxu1 %v4020_v4  ;;  %2666 = vmatpush.bf16.msrb.mxu2 %v4100_v57  ;;  %v4196_v57 = vor.u32 %v4581_v31, %v4193_v3  ;;  %v4587_v31 = vld [vmem:[#allocation11 + $0x20] sm:$0xff]  ;;  %v4598_v3 = vld [vmem:[#allocation11 + $0x78] sm:$0xff] }
 0x159   :  { %2641 = vmatpush.bf16.msrb.mxu0 %v3948_v12  ;;  %v1972_v49 = vpop.f32.mrf.mxu0  ;;  %v4574_v12 = vld [vmem:[#allocation9 + $0x1b4] sm:$0xf0] }
 0x15a   :  { %2655 = vmatpush.bf16.msrb.mxu1 %v4012_v16  ;;  %v1986_v42 = vpop.f32.mrf.mxu1  ;;  %2667 = vmatpush.bf16.msrb.mxu2 %v4092_v35  ;;  %v1973_v46 = vadd.f32 %v1972_v49, %v1959_v37  ;;  %v4160_v15 = vor.u32 %v4574_v12, %v4159_v7  ;;  %v4188_v37 = vor.u32 %v4579_v9, %v4185_v34  ;;  %v4597_v9 = vld [vmem:[#allocation11 + $0x70] sm:$0xff]  ;;  %v4584_v34 = vld [vmem:[#allocation11 + $0x8] sm:$0xff] }
 0x15c   :  { %2642 = vmatmul.bf16.vlgmr.msrb.gmra.mxu0 %v4944_v11  ;;  %v4084_v11 = vor.u32 %v4553_v41, %v4081_v38  ;;  %v1987_v51 = vadd.f32 %v1986_v42, %v1973_v46  ;;  %2624 = vmatpush.bf16.msra.mxu3 %v4160_v15  ;;  %v4577_v41 = vld [vmem:[#allocation9 + $0x1d4] sm:$0xf]  ;;  %v4177_v38 = vld [vmem:[#allocation9 + $0x1d8] sm:$0xf0]  ;;  %v4575_v42 = vld [vmem:[#allocation9 + $0x1c4] sm:$0xf] }
 0x15d   :  { %2656 = vmatmul.bf16.vlgmr.msrb.gmra.mxu1 %v4946_v36  ;;  %v4551_v36 = vld [vmem:[#allocation9 + $0x104] sm:$0xf]  ;;  %v4180_v45 = vor.u32 %v4577_v41, %v4177_v38  ;;  %2828 = vmatpush.bf16.msra.mxu0 %v4590_v26  ;;  %v4594_v41 = vld [vmem:[#allocation11 + $0x58] sm:$0xff] }
 0x15e   :  { %2668 = vmatpush.bf16.msrb.mxu2 %v4084_v11  ;;  %v4076_v14 = vor.u32 %v4551_v36, %v4073_v30  ;;  %v4169_v11 = vld [vmem:[#allocation9 + $0x1c8] sm:$0xf0]  ;;  %v4573_v30 = vld [vmem:[#allocation9 + $0x1b4] sm:$0xf]  ;;  %2842 = vmatpush.bf16.msra.mxu1 %v4598_v3 }
 0x15f   :  { %v4172_v48 = vor.u32 %v4575_v42, %v4169_v11  ;;  %v4592_v42 = vld [vmem:[#allocation11 + $0x48] sm:$0xff] }
 0x160   :  { %2625 = vmatpush.bf16.msra.mxu3 %v4152_v22 }
 0x161   :  { %v2000_v52 = vpop.f32.mrf.mxu2  ;;  %v1974_v39 = vpop.f32.mrf.mxu0  ;;  %2829 = vmatpush.bf16.msra.mxu0 %v4589_v27 }
 0x162   :  { %v2014_v55 = vpop.f32.mrf.mxu3  ;;  %2669 = vmatpush.bf16.msrb.mxu2 %v4076_v14  ;;  %v2001_v56 = vadd.f32 %v2000_v52, %v1987_v51  ;;  %v1975_v1 = vadd.f32 %v1974_v39, %v1961_v54  ;;  %v1988_v43 = vpop.f32.mrf.mxu1  ;;  %v4164_v14 = vor.u32 %v4573_v30, %v4161_v50  ;;  %v4571_v52 = vld [vmem:[#allocation9 + $0x1a4] sm:$0xf]  ;;  %2843 = vmatpush.bf16.msra.mxu1 %v4597_v9 }
 0x163   :  { %v4156_v39 = vor.u32 %v4571_v52, %v4153_v53 }
 0x164   :  { %v2015_v47 = vadd.f32 %v2014_v55, %v2001_v56  ;;  %v1989_v61 = vadd.f32 %v1988_v43, %v1975_v1  ;;  %2626 = vmatpush.bf16.msra.mxu3 %v4144_v25  ;;  %v4145_v43 = vld [vmem:[#allocation9 + $0x198] sm:$0xf0] }
 0x165   :  { %v4148_v17 = vor.u32 %v4569_v44, %v4145_v43 }
 0x166   :  { %v2170_v6 = vadd.f32 %v2162_v18, %v2015_v47 }
 0x168   :  { %v2178_v16 = vmax.f32 %v2170_v6, 0.0  ;;  %2627 = vmatpush.bf16.msra.mxu3 %v4136_v29  ;;  %v4588_v29 = vld [vmem:[#allocation11 + $0x28] sm:$0xff] }
 0x169   :  { %v2002_v63 = vpop.f32.mrf.mxu2  ;;  %2830 = vmatpush.bf16.msra.mxu0 %v4588_v29 }
 0x16a   :  { %v2003_v4 = vadd.f32 %v2002_v63, %v1989_v61  ;;  %v2016_v5 = vpop.f32.mrf.mxu3  ;;  %v4567_v61 = vld [vmem:[#allocation9 + $0x184] sm:$0xf] }
 0x16b   :  { %v4140_v63 = vor.u32 %v4567_v61, %v4137_v58 }
 0x16c   :  { %v2017_v0 = vadd.f32 %v2016_v5, %v2003_v4  ;;  %2676 = vmatpush.bf16.msrb.mxu3 %v4196_v57  ;;  %v4585_v57 = vld [vmem:[#allocation11 + $0x10] sm:$0xff] }
 0x16d   :  { %2831 = vmatpush.bf16.msra.mxu0 %v4587_v31 }
 0x16e   :  { %v2174_v13 = vadd.f32 %v2162_v18, %v2017_v0 }
 0x170   :  { %v2182_v19 = vmax.f32 %v2174_v13, 0.0  ;;  %2677 = vmatpush.bf16.msrb.mxu3 %v4188_v37  ;;  %v2163_v13 = vperm.slane %v4938_v33, 3  ;;  %v4586_v33 = vld [vmem:[#allocation11 + $0x18] sm:$0xff]  ;;  %v4583_v37 = vld [vmem:[#allocation11] sm:$0xff] }
 0x171   :  { %2832 = vmatpush.bf16.msra.mxu0 %v4586_v33 }
 0x172   :  { %v2186_v20 = vpack.c.bf16 %v2182_v19, %v2178_v16 }
 0x174   :  { %2614 = vmatmul.bf16.vlgmr.msra.gmra.mxu2 %v2186_v20  ;;  %2678 = vmatpush.bf16.msrb.mxu3 %v4180_v45  ;;  %v4593_v45 = vld [vmem:[#allocation11 + $0x50] sm:$0xff] }
 0x175   :  { %2833 = vmatpush.bf16.msra.mxu0 %v4585_v57 }
 0x178   :  { %2679 = vmatpush.bf16.msrb.mxu3 %v4172_v48  ;;  %v4591_v48 = vld [vmem:[#allocation11 + $0x40] sm:$0xff] }
 0x179   :  { %v2028_v35 = vpop.f32.mrf.mxu0  ;;  %2834 = vmatpush.bf16.msra.mxu0 %v4584_v34 }
 0x17a   :  { %v2042_v40 = vpop.f32.mrf.mxu1 }
 0x17b   :  { %v2043_v51 = vadd.f32 %v2042_v40, %v2028_v35  ;;  %v4596_v35 = vld [vmem:[#allocation11 + $0x68] sm:$0xff]  ;;  %v4595_v40 = vld [vmem:[#allocation11 + $0x60] sm:$0xff] }
 0x17c   :  { %2680 = vmatpush.bf16.msrb.mxu3 %v4164_v14  ;;  %2844 = vmatpush.bf16.msra.mxu1 %v4596_v35 }
 0x17d   :  { %2835 = vmatpush.bf16.msra.mxu0 %v4583_v37 }
 0x180   :  { %2681 = vmatpush.bf16.msrb.mxu3 %v4156_v39  ;;  %2845 = vmatpush.bf16.msra.mxu1 %v4595_v40 }
 0x181   :  { %v2056_v49 = vpop.f32.mrf.mxu2  ;;  %v2030_v36 = vpop.f32.mrf.mxu0 }
 0x182   :  { %v2070_v46 = vpop.f32.mrf.mxu3  ;;  %v2044_v62 = vpop.f32.mrf.mxu1  ;;  %v2057_v54 = vadd.f32 %v2056_v49, %v2043_v51 }
 0x183   :  { %v2045_v56 = vadd.f32 %v2044_v62, %v2030_v36 }
 0x184   :  { %2670 = vmatmul.bf16.vlgmr.msrb.gmra.mxu2 %v2186_v20  ;;  %v2071_v59 = vadd.f32 %v2070_v46, %v2057_v54  ;;  %2682 = vmatpush.bf16.msrb.mxu3 %v4148_v17  ;;  %v2252_v46 = vld [vmem:[%s4970_s4] sm:$0x3] }
 0x185   :  { %2846 = vmatpush.bf16.msra.mxu1 %v4594_v41  ;;  %v2254_v30 = vperm.slane %v2252_v46, 0  ;;  %v2255_v17 = vperm.slane %v2252_v46, 1 }
 0x188   :  { %2683 = vmatpush.bf16.msrb.mxu3 %v4140_v63 }
 0x189   :  { %v2058_v55 = vpop.f32.mrf.mxu2  ;;  %2847 = vmatpush.bf16.msra.mxu1 %v4593_v45 }
 0x18a   :  { %v2072_v1 = vpop.f32.mrf.mxu3  ;;  %v2059_v47 = vadd.f32 %v2058_v55, %v2045_v56 }
 0x18c   :  { %v2073_v2 = vadd.f32 %v2072_v1, %v2059_v47 }
 0x18d   :  { %2848 = vmatpush.bf16.msra.mxu1 %v4592_v42 }
 0x191   :  { %2849 = vmatpush.bf16.msra.mxu1 %v4591_v48 }
 0x199   :  { %v2084_v32 = vpop.f32.mrf.mxu0 }
 0x19a   :  { %v2098_v60 = vpop.f32.mrf.mxu1  ;;  %v2085_v18 = vadd.f32 %v2084_v32, %v2071_v59 }
 0x19c   :  { %v2099_v4 = vadd.f32 %v2098_v60, %v2085_v18 }
 0x1a1   :  { %v2112_v10 = vpop.f32.mrf.mxu2  ;;  %v2086_v28 = vpop.f32.mrf.mxu0 }
 0x1a2   :  { %v2126_v5 = vpop.f32.mrf.mxu3  ;;  %v2113_v6 = vadd.f32 %v2112_v10, %v2099_v4  ;;  %v2087_v0 = vadd.f32 %v2086_v28, %v2073_v2  ;;  %v2100_v7 = vpop.f32.mrf.mxu1 }
 0x1a4   :  { %v2127_v12 = vadd.f32 %v2126_v5, %v2113_v6  ;;  %v2101_v15 = vadd.f32 %v2100_v7, %v2087_v0 }
 0x1a6   :  { %v2171_v21 = vadd.f32 %v2163_v13, %v2127_v12 }
 0x1a8   :  { %v2179_v23 = vmax.f32 %v2171_v21, 0.0  ;;  %v4612_v21 = vld [vmem:[%s4972_s6] ss:$0 sm:$0xff]  ;;  %s4785_s6 = smov [#allocation12]  }
 0x1a9   :  { %v2114_v16 = vpop.f32.mrf.mxu2  ;;  %s2900_s8 = sshll.u32 %s4785_s6, 4  ;;  %s2901_s8 = int_to_ptr.vmem [resolvable:$true] %s2900_s8 }
 0x1aa   :  { %v2115_v19 = vadd.f32 %v2114_v16, %v2101_v15  ;;  %v2128_v20 = vpop.f32.mrf.mxu3 }
 0x1ac   :  { %v2129_v8 = vadd.f32 %v2128_v20, %v2115_v19 }
 0x1ae   :  { %v2175_v22 = vadd.f32 %v2163_v13, %v2129_v8 }
 0x1b0   :  { %v2183_v24 = vmax.f32 %v2175_v22, 0.0 }
 0x1b2   :  { %v2187_v25 = vpack.c.bf16 %v2183_v24, %v2179_v23 }
 0x1b4   :  { %2628 = vmatmul.bf16.vlgmr.msra.gmra.mxu3 %v2187_v25 }
 0x1b9   :  { %v2587_v38 = vpop.f32.mrf.mxu0 }
 0x1ba   :  { %v2601_v11 = vpop.f32.mrf.mxu1  ;;  %v2588_v14 = vadd.f32 %v2587_v38, %v2254_v30 }
 0x1bc   :  { %v2602_v52 = vadd.f32 %v2601_v11, %v2588_v14 }
 0x1c1   :  { %v2589_v36 = vpop.f32.mrf.mxu0 }
 0x1c2   :  { %v2603_v62 = vpop.f32.mrf.mxu1  ;;  %v2590_v53 = vadd.f32 %v2589_v36, %v2254_v30 }
 0x1c4   :  { %2684 = vmatmul.bf16.vlgmr.msrb.gmra.mxu3 %v2187_v25  ;;  %v2604_v39 = vadd.f32 %v2603_v62, %v2590_v53 }
 0x1d9   :  { %v2643_v54 = vpop.f32.mrf.mxu0 }
 0x1da   :  { %v2657_v43 = vpop.f32.mrf.mxu1  ;;  %v2644_v58 = vadd.f32 %v2643_v54, %v2255_v17 }
 0x1dc   :  { %v2658_v2 = vadd.f32 %v2657_v43, %v2644_v58 }
 0x1e1   :  { %v2645_v61 = vpop.f32.mrf.mxu0 }
 0x1e2   :  { %v2646_v10 = vadd.f32 %v2645_v61, %v2255_v17  ;;  %v2659_v4 = vpop.f32.mrf.mxu1 }
 0x1e4   :  { %v2660_v28 = vadd.f32 %v2659_v4, %v2646_v10 }
 0x1f7   :  { %v2615_v49 = vpop.f32.mrf.mxu2 }
 0x1f8   :  { %v2616_v55 = vadd.f32 %v2615_v49, %v2602_v52 }
 0x1ff   :  { %v2617_v50 = vpop.f32.mrf.mxu2 }
 0x200   :  { %v2618_v56 = vadd.f32 %v2617_v50, %v2604_v39 }
 0x207   :  { %v2671_v59 = vpop.f32.mrf.mxu2 }
 0x208   :  { %v2672_v6 = vadd.f32 %v2671_v59, %v2658_v2 }
 0x20f   :  { %v2673_v5 = vpop.f32.mrf.mxu2 }
 0x210   :  { %v2674_v0 = vadd.f32 %v2673_v5, %v2660_v28 }
 0x237   :  { %v2629_v51 = vpop.f32.mrf.mxu3 }
 0x238   :  { %v2630_v1 = vadd.f32 %v2629_v51, %v2616_v55 }
 0x23a   :  { %v2690_v60 = vmax.f32 %v2630_v1, 0.0 }
 0x23f   :  { %v2631_v32 = vpop.f32.mrf.mxu3 }
 0x240   :  { %v2632_v44 = vadd.f32 %v2631_v32, %v2618_v56 }
 0x242   :  { %v2692_v47 = vmax.f32 %v2632_v44, 0.0 }
 0x244   :  { %v2694_v18 = vpack.c.bf16 %v2692_v47, %v2690_v60 }
 0x246   :  { %2836 = vmatmul.bf16.vlgmr.msra.gmra.mxu0 %v2694_v18 }
 0x247   :  { %v2685_v63 = vpop.f32.mrf.mxu3 }
 0x248   :  { %v2686_v7 = vadd.f32 %v2685_v63, %v2672_v6 }
 0x24a   :  { %v2691_v15 = vmax.f32 %v2686_v7, 0.0 }
 0x24f   :  { %v2687_v12 = vpop.f32.mrf.mxu3 }
 0x250   :  { %v2688_v13 = vadd.f32 %v2687_v12, %v2674_v0 }
 0x252   :  { %v2693_v16 = vmax.f32 %v2688_v13, 0.0 }
 0x254   :  { %v2695_v19 = vpack.c.bf16 %v2693_v16, %v2691_v15 }
 0x256   :  { %2850 = vmatmul.bf16.vlgmr.msra.gmra.mxu1 %v2695_v19 }
 0x2c3   :  { %v2837_v20 = vpop.f32.mrf.mxu0 }
 0x2c4   :  { %v2838_v8 = vadd.f32 %v4612_v21, %v2837_v20 }
 0x2cb   :  { %v2839_v25 = vpop.f32.mrf.mxu0 }
 0x2cc   :  { %v2840_v26 = vadd.f32 %v4612_v21, %v2839_v25 }
 0x2d3   :  { %v2851_v22 = vpop.f32.mrf.mxu1 }
 0x2d4   :  { %v2852_v23 = vadd.f32 %v2851_v22, %v2838_v8 }
 0x2d6   :  { %v4261_v24 = vmul.f32 -1.442695, %v2852_v23 }
 0x2d8   :  { %4613 = vpow2.f32 %v4261_v24 }
 0x2db   :  { %v2853_v27 = vpop.f32.mrf.mxu1 }
 0x2dc   :  { %v2854_v29 = vadd.f32 %v2853_v27, %v2840_v26 }
 0x2de   :  { %v4614_v31 = vpop.eup %4613  ;;  %v4262_v33 = vmul.f32 -1.442695, %v2854_v29 }
 0x2df   :  { %v2862_v3 = vadd.f32 1.0, %v4614_v31 }
 0x2e0   :  { %4615 = vpow2.f32 %v4262_v33 }
 0x2e1   :  { %4617 = vrcp.f32 %v2862_v3  ;;  %v2875_v40 = vand.u32 2147483648, %v2862_v3  ;;  %v2873_v38 = vand.u32 2147483647, %v2862_v3  ;;  %vm2869_vm1 = vweird.f32 %v2862_v3 }
 0x2e3   :  { %v2876_v42 = vor.u32 1.1754944e-38, %v2875_v40  ;;  %vm2874_vm3 = vcmp.eq.f32.partialorder %v2873_v38, 8.507059e+37 }
 0x2e6   :  { %v4616_v57 = vpop.eup %4615 }
 0x2e7   :  { %v4618_v9 = vpop.eup %4617  ;;  %v2863_v34 = vadd.f32 1.0, %v4616_v57 }
 0x2e8   :  { %v2865_v35 = vmul.f32 %v4618_v9, %v2862_v3  ;;  %vm2870_vm0 = vweird.f32 %v4618_v9 }
 0x2e9   :  { %4619 = vrcp.f32 %v2863_v34  ;;  %vm2871_vm2 = vmor %vm2869_vm1, %vm2870_vm0  ;;  %v2890_v30 = vand.u32 2147483648, %v2863_v34  ;;  %v2888_v51 = vand.u32 2147483647, %v2863_v34  ;;  %vm2884_vm5 = vweird.f32 %v2863_v34 }
 0x2ea   :  { %v2866_v37 = vsub.f32 1.0, %v2865_v35 }
 0x2eb   :  { %v2891_v62 = vor.u32 1.1754944e-38, %v2890_v30  ;;  %vm2889_vm7 = vcmp.eq.f32.partialorder %v2888_v51, 8.507059e+37 }
 0x2ec   :  { %v2867_v41 = vmul.f32 %v4618_v9, %v2866_v37 }
 0x2ee   :  { %v2868_v45 = vadd.f32 %v4618_v9, %v2867_v41 }
 0x2ef   :  { %v4620_v49 = vpop.eup %4619 }
 0x2f0   :  { %v2880_v11 = vmul.f32 %v4620_v49, %v2863_v34  ;;  %v2872_v46 = vsel %vm2871_vm2, %v4618_v9, %v2868_v45  ;;  %vm2885_vm4 = vweird.f32 %v4620_v49 }
 0x2f1   :  { %v2877_v48 = vsel %vm2874_vm3, %v2876_v42, %v2872_v46  ;;  %vm2886_vm6 = vmor %vm2884_vm5, %vm2885_vm4 }
 0x2f2   :  { %v2881_v36 = vsub.f32 1.0, %v2880_v11  ;;  %2894 = vst [vmem:[#allocation12] sm:$0xff] %v2877_v48 }
 0x2f4   :  { %v2882_v50 = vmul.f32 %v4620_v49, %v2881_v36 }
 0x2f6   :  { %v2883_v14 = vadd.f32 %v4620_v49, %v2882_v50 }
 0x2f8   :  { %v2887_v52 = vsel %vm2886_vm6, %v4620_v49, %v2883_v14 }
 0x2f9   :  { %v2892_v53 = vsel %vm2889_vm7, %v2891_v62, %v2887_v52 }
 0x2fa   :  { %2895 = vst [vmem:[#allocation12 + $0x8] sm:$0xff] %v2892_v53 }
 0x2fb   :  { %2908 = dma.vmem_to_hbm [thread:$0]  %s2901_s8, 256, %s2903_s11, [#allocation5], %s4777_s13, %s4777_s13, %s4778_s14  }
 0x2fc   :  { %4771 = dma.done.wait [#allocation5], 256  }
 0x2fd   :  { %4772 = vsyncadd [#allocation5], 4294967040 }
 0x2fe   :  { %2913 = vsyncpa [#allocation4], 1 }
 0x2ff   :  { %2914 = vsyncpa [#allocation7], 1 }
 0x300   :  { %2915 = vsyncpa [#allocation10], 1 }
 0x301   :  { %2916 = vsyncpa [#allocation5], 1 }

</bundles_post_ra>
